<compile_context>
chip_gen: v7x
topology: tpu7x:2x2x1
jax: 0.10.0
libtpu: 0.0.40
codegen_flags: <defaults>
</compile_context>

<pallas_src>
import math
from functools import partial

import jax
import jax.numpy as jnp
from jax.experimental import pallas as pl
from jax.experimental.pallas import tpu as pltpu


def _round_up(x, m):
    return ((x + m - 1) // m) * m


def _sublane_multiple(compute_dtype):
    # bf16 vregs pack (16, 128); f32 packs (8, 128).
    return 16 if jnp.dtype(compute_dtype).itemsize < 4 else 8


def _choose_tq(Nq, compute_dtype, tq=None):
    if tq is None:
        tq = 256 if Nq >= 256 else Nq
    return _round_up(tq, _sublane_multiple(compute_dtype))


# ----------------------------------------------------------------------------
# One multi-head cross-attention on a (tq, E) query tile.
# K/V are already projected (hoisted to the wrapper); heads are batched.
# ----------------------------------------------------------------------------
def _attn_tile(x, k, v, wq, wo, *, num_heads, compute_dtype):
    """x: (tq, E); k, v: (Nk, E) pre-projected; wq: (E, E) [in,out] with 1/sqrt(hd) folded;
    wo: (E, E) [in,out] unsplit out-proj. Returns f32 (tq, E)."""
    tq, E = x.shape
    Nk = k.shape[0]
    hd = E // num_heads

    xc = x.astype(compute_dtype)

    # Q projection: one full-width MXU matmul, f32 accumulation.
    q = jnp.dot(xc, wq.astype(compute_dtype), preferred_element_type=jnp.float32)  # (tq, E)
    q = q.astype(compute_dtype)

    # Head split via a single relayout per tensor (no per-head lane-slice copies).
    qh = q.reshape(tq, num_heads, hd).transpose(1, 0, 2)                           # (H, tq, hd)
    kh = k.astype(compute_dtype).reshape(Nk, num_heads, hd).transpose(1, 0, 2)     # (H, Nk, hd)
    vh = v.astype(compute_dtype).reshape(Nk, num_heads, hd).transpose(1, 0, 2)     # (H, Nk, hd)

    # Scores for all heads at once (scale folded into Wq); softmax stats in f32.
    s = jnp.einsum("hqd,hkd->hqk", qh, kh, preferred_element_type=jnp.float32)     # (H, tq, Nk)
    s = s - jnp.max(s, axis=-1, keepdims=True)
    p = jnp.exp(s)
    l = jnp.sum(p, axis=-1, keepdims=True)                                          # (H, tq, 1)

    # Un-normalized P @ V, then deferred normalization on the (H, tq, hd) output
    # (Nk/hd fewer VPU multiplies than scaling P; reciprocal goes to the EUP slot).
    o = jnp.einsum("hqk,hkd->hqd", p.astype(compute_dtype), vh,
                   preferred_element_type=jnp.float32)                              # (H, tq, hd) f32
    o = o * pl.reciprocal(l, approx=True)

    # Head concat + one full-width out-projection (contraction dim = E, full MXU depth).
    o_cat = o.transpose(1, 0, 2).reshape(tq, E)                                     # (tq, E)
    out = jnp.dot(o_cat.astype(compute_dtype), wo.astype(compute_dtype),
                  preferred_element_type=jnp.float32)                               # (tq, E) f32
    return out


# ----------------------------------------------------------------------------
# Fused kernel: coarse + fine cross-attention in a single grid step.
# ----------------------------------------------------------------------------
def _fused_decoder_kernel(x_ref, k1_ref, v1_ref, k2_ref, v2_ref,
                          wq1_ref, wo1_ref, wq2_ref, wo2_ref,
                          coarse_ref, fine_ref,
                          *, num_heads, compute_dtype):
    x = x_ref[0]                                                   # (tq, E) query tile
    coarse = _attn_tile(x, k1_ref[0], v1_ref[0], wq1_ref[...], wo1_ref[...],
                        num_heads=num_heads, compute_dtype=compute_dtype)
    coarse_ref[0] = coarse.astype(coarse_ref.dtype)
    # Second attention consumes the coarse tile directly (no HBM round trip).
    fine = _attn_tile(coarse, k2_ref[0], v2_ref[0], wq2_ref[...], wo2_ref[...],
                      num_heads=num_heads, compute_dtype=compute_dtype)
    fine_ref[0] = fine.astype(fine_ref.dtype)


def _single_block_kernel(x_ref, k_ref, v_ref, wq_ref, wo_ref, o_ref,
                         *, num_heads, compute_dtype):
    out = _attn_tile(x_ref[0], k_ref[0], v_ref[0], wq_ref[...], wo_ref[...],
                     num_heads=num_heads, compute_dtype=compute_dtype)
    o_ref[0] = out.astype(o_ref.dtype)


# ----------------------------------------------------------------------------
# Wrappers
# ----------------------------------------------------------------------------
def _prep_block_weights(p, num_heads, compute_dtype):
    """PyTorch Linear convention (out, in) -> (in, out); fold 1/sqrt(hd) into Wq.
    Wk/Wv stay f32 (used only for the hoisted wrapper-side projection); Wo kept unsplit."""
    E = p["wq"].shape[0]
    hd = E // num_heads
    wq = (p["wq"].T * (1.0 / math.sqrt(hd))).astype(compute_dtype)   # (E, E)
    wk = p["wk"].T                                                   # (C, E)
    wv = p["wv"].T                                                   # (C, E)
    wo = p["wo"].T.astype(compute_dtype)                             # (E, E)
    return wq, wk, wv, wo


def _project_kv(cond, w, compute_dtype):
    # Hoisted K/V projection: batch-only dependence, computed ONCE per batch here
    # instead of once per query tile inside the kernel.
    return jnp.einsum("bnc,ce->bne", cond.astype(compute_dtype), w.astype(compute_dtype),
                      preferred_element_type=jnp.float32).astype(compute_dtype)


_VMEM_LIMIT = 64 * 1024 * 1024   # v7x physical ceiling; raise to ~100 MiB on v5e/v6e.


def decoder_cross_attn_fused(params, pcl_query, pcl_latent, image_feats, *,
                             num_heads, compute_dtype=jnp.bfloat16, tq=None,
                             out_dtype=None):
    B, Nq, E = pcl_query.shape
    _, Nk1, _ = pcl_latent.shape
    _, Nk2, _ = image_feats.shape
    out_dtype = out_dtype or pcl_query.dtype

    tq = _choose_tq(Nq, compute_dtype, tq)
    Nq_pad = _round_up(Nq, tq)
    n_qt = Nq_pad // tq

    x = pcl_query.astype(compute_dtype)
    if Nq_pad != Nq:
        # Zero-padded query rows are independent and sliced off below.
        x = jnp.pad(x, ((0, 0), (0, Nq_pad - Nq), (0, 0)))

    wq1, wk1, wv1, wo1 = _prep_block_weights(params["cross_attn"], num_heads, compute_dtype)
    wq2, wk2, wv2, wo2 = _prep_block_weights(params["cross_attn_color"], num_heads, compute_dtype)

    k1 = _project_kv(pcl_latent, wk1, compute_dtype)    # (B, Nk1, E)
    v1 = _project_kv(pcl_latent, wv1, compute_dtype)    # (B, Nk1, E)
    k2 = _project_kv(image_feats, wk2, compute_dtype)   # (B, Nk2, E)
    v2 = _project_kv(image_feats, wv2, compute_dtype)   # (B, Nk2, E)

    def wspec(shape):
        return pl.BlockSpec(shape, lambda b, i: (0,) * len(shape))   # resident weights

    kernel = partial(_fused_decoder_kernel, num_heads=num_heads, compute_dtype=compute_dtype)

    in_itemsize = jnp.dtype(compute_dtype).itemsize
    out_itemsize = jnp.dtype(out_dtype).itemsize
    flops = int(2 * B * Nq_pad * E * (2 * E + 2 * Nk1)          # block 1: q-proj, S, PV, out-proj
                + 2 * B * Nq_pad * E * (2 * E + 2 * Nk2))       # block 2
    transcendentals = int(B * Nq_pad * num_heads * (Nk1 + Nk2))
    bytes_accessed = int((x.size + k1.size + v1.size + k2.size + v2.size
                          + wq1.size + wo1.size + wq2.size + wo2.size) * in_itemsize
                         + 2 * B * Nq_pad * E * out_itemsize)

    coarse, fine = pl.pallas_call(
        kernel,
        out_shape=(jax.ShapeDtypeStruct((B, Nq_pad, E), out_dtype),
                   jax.ShapeDtypeStruct((B, Nq_pad, E), out_dtype)),
        grid=(B, n_qt),
        in_specs=[
            pl.BlockSpec((1, tq, E), lambda b, i: (b, i, 0)),      # query tile
            pl.BlockSpec((1, Nk1, E), lambda b, i: (b, 0, 0)),     # K1 (per batch)
            pl.BlockSpec((1, Nk1, E), lambda b, i: (b, 0, 0)),     # V1
            pl.BlockSpec((1, Nk2, E), lambda b, i: (b, 0, 0)),     # K2
            pl.BlockSpec((1, Nk2, E), lambda b, i: (b, 0, 0)),     # V2
            wspec((E, E)), wspec((E, E)),                          # Wq1, Wo1
            wspec((E, E)), wspec((E, E)),                          # Wq2, Wo2
        ],
        out_specs=(pl.BlockSpec((1, tq, E), lambda b, i: (b, i, 0)),
                   pl.BlockSpec((1, tq, E), lambda b, i: (b, i, 0))),
        compiler_params=pltpu.CompilerParams(
            dimension_semantics=("parallel", "parallel"),
            vmem_limit_bytes=_VMEM_LIMIT),
        cost_estimate=pl.CostEstimate(flops=flops, transcendentals=transcendentals,
                                      bytes_accessed=bytes_accessed),
    )(x, k1, v1, k2, v2, wq1, wo1, wq2, wo2)

    if Nq_pad != Nq:
        coarse = coarse[:, :Nq]
        fine = fine[:, :Nq]
    return coarse, fine


def cross_attn_block(params_block, x, cond, *, num_heads,
                     compute_dtype=jnp.bfloat16, tq=None, out_dtype=None):
    """Single CrossAttnBlock (feedforward=False), used when decode_with_extra_info is None."""
    B, Nq, E = x.shape
    _, Nk, _ = cond.shape
    out_dtype = out_dtype or x.dtype
    tq = _choose_tq(Nq, compute_dtype, tq)
    Nq_pad = _round_up(Nq, tq)

    xx = x.astype(compute_dtype)
    if Nq_pad != Nq:
        xx = jnp.pad(xx, ((0, 0), (0, Nq_pad - Nq), (0, 0)))

    wq, wk, wv, wo = _prep_block_weights(params_block, num_heads, compute_dtype)
    k = _project_kv(cond, wk, compute_dtype)   # (B, Nk, E)
    v = _project_kv(cond, wv, compute_dtype)   # (B, Nk, E)

    def wspec(shape):
        return pl.BlockSpec(shape, lambda b, i: (0,) * len(shape))

    in_itemsize = jnp.dtype(compute_dtype).itemsize
    out_itemsize = jnp.dtype(out_dtype).itemsize
    flops = int(2 * B * Nq_pad * E * (2 * E + 2 * Nk))
    transcendentals = int(B * Nq_pad * num_heads * Nk)
    bytes_accessed = int((xx.size + k.size + v.size + wq.size + wo.size) * in_itemsize
                         + B * Nq_pad * E * out_itemsize)

    kernel = partial(_single_block_kernel, num_heads=num_heads, compute_dtype=compute_dtype)
    out = pl.pallas_call(
        kernel,
        out_shape=jax.ShapeDtypeStruct((B, Nq_pad, E), out_dtype),
        grid=(B, Nq_pad // tq),
        in_specs=[
            pl.BlockSpec((1, tq, E), lambda b, i: (b, i, 0)),
            pl.BlockSpec((1, Nk, E), lambda b, i: (b, 0, 0)),
            pl.BlockSpec((1, Nk, E), lambda b, i: (b, 0, 0)),
            wspec((E, E)), wspec((E, E)),
        ],
        out_specs=pl.BlockSpec((1, tq, E), lambda b, i: (b, i, 0)),
        compiler_params=pltpu.CompilerParams(
            dimension_semantics=("parallel", "parallel"),
            vmem_limit_bytes=_VMEM_LIMIT),
        cost_estimate=pl.CostEstimate(flops=flops, transcendentals=transcendentals,
                                      bytes_accessed=bytes_accessed),
    )(xx, k, v, wq, wo)
    return out[:, :Nq] if Nq_pad != Nq else out


def decoder_cross_attn_forward(params, pcl_query, pcl_latent, extra_info=None, *,
                               num_heads, decode_with_extra_info=None,
                               compute_dtype=jnp.bfloat16, tq=None):
    """Mirrors DecoderCrossAttn.forward for mlp=False."""
    if (decode_with_extra_info is not None
            and decode_with_extra_info["type"] == "dinov2p14_feat"):
        coarse, fine = decoder_cross_attn_fused(
            params, pcl_query, pcl_latent, extra_info["image_feats"],
            num_heads=num_heads, compute_dtype=compute_dtype, tq=tq)
        return {"coarse": coarse, "fine": fine}
    # TODO(synk): 'decoder_dinov2p14_feat' / 'decoder_resnet18_feat' branches need full
    # DINOv2 / ResNet-18 encoders + resize_image; not implemented here.
    return cross_attn_block(params["cross_attn"], pcl_query, pcl_latent,
                            num_heads=num_heads, compute_dtype=compute_dtype, tq=tq)


# ----------------------------------------------------------------------------
# Pure-JAX reference (mirrors torch.nn.MultiheadAttention math, bias-free) for validation.
# ----------------------------------------------------------------------------
def _mha_ref(x, cond, p, num_heads):
    B, Nq, E = x.shape
    hd = E // num_heads
    q = jnp.einsum("bnd,ed->bne", x, p["wq"])
    k = jnp.einsum("bnc,ec->bne", cond, p["wk"])
    v = jnp.einsum("bnc,ec->bne", cond, p["wv"])
    q = q.reshape(B, Nq, num_heads, hd).transpose(0, 2, 1, 3)
    k = k.reshape(B, -1, num_heads, hd).transpose(0, 2, 1, 3)
    v = v.reshape(B, -1, num_heads, hd).transpose(0, 2, 1, 3)
    s = jnp.einsum("bhqd,bhkd->bhqk", q, k) / math.sqrt(hd)
    a = jax.nn.softmax(s, axis=-1)
    o = jnp.einsum("bhqk,bhkd->bhqd", a, v)
    o = o.transpose(0, 2, 1, 3).reshape(B, Nq, E)
    return jnp.einsum("bne,oe->bno", o, p["wo"])


def _ref_forward(params, pcl_query, pcl_latent, extra_info, num_heads):
    coarse = _mha_ref(pcl_query, pcl_latent, params["cross_attn"], num_heads)
    fine = _mha_ref(coarse, extra_info["image_feats"], params["cross_attn_color"], num_heads)
    return {"coarse": coarse, "fine": fine}


# ----------------------------------------------------------------------------
# Deterministic parameter init (synthetic, matching module __init__ shapes).
# ----------------------------------------------------------------------------
def init_params(key, query_dim, context_dim, color_cond_dim):
    def block_params(k, inner_dim, cond_dim):
        k1, k2, k3, k4 = jax.random.split(k, 4)
        s = 0.05
        return {
            "wq": s * jax.random.normal(k1, (inner_dim, inner_dim), jnp.float32),
            "wk": s * jax.random.normal(k2, (inner_dim, cond_dim), jnp.float32),
            "wv": s * jax.random.normal(k3, (inner_dim, cond_dim), jnp.float32),
            "wo": s * jax.random.normal(k4, (inner_dim, inner_dim), jnp.float32),
        }
    ka, kb = jax.random.split(key)
    return {
        "cross_attn": block_params(ka, query_dim, context_dim),
        "cross_attn_color": block_params(kb, query_dim, color_cond_dim),
    }


if __name__ == "__main__":
    # Small shapes consistent with the module (Nq not a tile multiple -> exercises padding).
    B, Nq, Nk, Nimg = 2, 20, 16, 12
    query_dim, context_dim, color_cond_dim, num_heads = 32, 48, 24, 4
    decode_with_extra_info = {"type": "dinov2p14_feat", "cond_dim": color_cond_dim}

    key = jax.random.PRNGKey(0)
    kp, kq, kl, kf = jax.random.split(key, 4)
    params = init_params(kp, query_dim, context_dim, color_cond_dim)

    pcl_query = jax.random.normal(kq, (B, Nq, query_dim), jnp.float32)
    pcl_latent = jax.random.normal(kl, (B, Nk, context_dim), jnp.float32)
    extra_info = {"image_feats": jax.random.normal(kf, (B, Nimg, color_cond_dim), jnp.float32)}

    ref = _ref_forward(params, pcl_query, pcl_latent, extra_info, num_heads)

    # f32 compute path, multi-tile query grid (tq=16 -> 2 q-tiles incl. a padded tail).
    out_f32 = decoder_cross_attn_forward(
        params, pcl_query, pcl_latent, extra_info,
        num_heads=num_heads, decode_with_extra_info=decode_with_extra_info,
        compute_dtype=jnp.float32, tq=16)
    out_f32 = jax.block_until_ready(out_f32)
    for name in ("coarse", "fine"):
        assert out_f32[name].shape == (B, Nq, query_dim)
        assert jnp.allclose(out_f32[name], ref[name], atol=5e-3, rtol=5e-3), name

    # bf16 MXU path (f32 accumulation, f32 softmax stats), default query tiling.
    out_bf16 = decoder_cross_attn_forward(
        params, pcl_query, pcl_latent, extra_info,
        num_heads=num_heads, decode_with_extra_info=decode_with_extra_info,
        compute_dtype=jnp.bfloat16)
    out_bf16 = jax.block_until_ready(out_bf16)
    for name in ("coarse", "fine"):
        assert out_bf16[name].shape == (B, Nq, query_dim)
        assert jnp.allclose(out_bf16[name], ref[name], atol=5e-2, rtol=5e-2), name

    print("KERNEL_OK")
</pallas_src>

<mosaic_0001>
module attributes {stable_mosaic.version = 11 : i64} {
  func.func @_fused_decoder_kernel(%arg0: i32, %arg1: i32, %arg2: memref<1x16x32xf32, #tpu.memory_space<vmem>>, %arg3: memref<1x16x32xf32, #tpu.memory_space<vmem>>, %arg4: memref<1x16x32xf32, #tpu.memory_space<vmem>>, %arg5: memref<1x12x32xf32, #tpu.memory_space<vmem>>, %arg6: memref<1x12x32xf32, #tpu.memory_space<vmem>>, %arg7: memref<32x32xf32, #tpu.memory_space<vmem>>, %arg8: memref<32x32xf32, #tpu.memory_space<vmem>>, %arg9: memref<32x32xf32, #tpu.memory_space<vmem>>, %arg10: memref<32x32xf32, #tpu.memory_space<vmem>>, %arg11: memref<1x16x32xf32, #tpu.memory_space<vmem>>, %arg12: memref<1x16x32xf32, #tpu.memory_space<vmem>>) attributes {dimension_semantics = [#tpu.dimension_semantics<parallel>, #tpu.dimension_semantics<parallel>], iteration_bounds = array<i64: 2, 2>, scalar_prefetch = 0 : i64, scratch_operands = 0 : i64, tpu.core_type = #tpu.core_type<tc>, window_params = [{transform_indices = @transform_0, window_bounds = array<i64: 1, 16, 32>}, {transform_indices = @transform_1, window_bounds = array<i64: 1, 16, 32>}, {transform_indices = @transform_2, window_bounds = array<i64: 1, 16, 32>}, {transform_indices = @transform_3, window_bounds = array<i64: 1, 12, 32>}, {transform_indices = @transform_4, window_bounds = array<i64: 1, 12, 32>}, {pipeline_mode = #tpu.pipeline_mode<synchronous>, transform_indices = @transform_5, window_bounds = array<i64: 32, 32>}, {pipeline_mode = #tpu.pipeline_mode<synchronous>, transform_indices = @transform_6, window_bounds = array<i64: 32, 32>}, {pipeline_mode = #tpu.pipeline_mode<synchronous>, transform_indices = @transform_7, window_bounds = array<i64: 32, 32>}, {pipeline_mode = #tpu.pipeline_mode<synchronous>, transform_indices = @transform_8, window_bounds = array<i64: 32, 32>}, {transform_indices = @transform_9, window_bounds = array<i64: 1, 16, 32>}, {transform_indices = @transform_10, window_bounds = array<i64: 1, 16, 32>}]} {
    %c0 = arith.constant 0 : index
    %c0_0 = arith.constant 0 : index
    %c0_1 = arith.constant 0 : index
    %0 = vector.load %arg2[%c0, %c0_0, %c0_1] : memref<1x16x32xf32, #tpu.memory_space<vmem>>, vector<1x16x32xf32>
    %1 = vector.shape_cast %0 : vector<1x16x32xf32> to vector<16x32xf32>
    %c0_2 = arith.constant 0 : index
    %c0_3 = arith.constant 0 : index
    %c0_4 = arith.constant 0 : index
    %2 = vector.load %arg3[%c0_2, %c0_3, %c0_4] : memref<1x16x32xf32, #tpu.memory_space<vmem>>, vector<1x16x32xf32>
    %3 = vector.shape_cast %2 : vector<1x16x32xf32> to vector<16x32xf32>
    %c0_5 = arith.constant 0 : index
    %c0_6 = arith.constant 0 : index
    %c0_7 = arith.constant 0 : index
    %4 = vector.load %arg4[%c0_5, %c0_6, %c0_7] : memref<1x16x32xf32, #tpu.memory_space<vmem>>, vector<1x16x32xf32>
    %5 = vector.shape_cast %4 : vector<1x16x32xf32> to vector<16x32xf32>
    %c0_8 = arith.constant 0 : index
    %c0_9 = arith.constant 0 : index
    %6 = vector.load %arg7[%c0_8, %c0_9] : memref<32x32xf32, #tpu.memory_space<vmem>>, vector<32x32xf32>
    %c0_10 = arith.constant 0 : index
    %c0_11 = arith.constant 0 : index
    %7 = vector.load %arg8[%c0_10, %c0_11] : memref<32x32xf32, #tpu.memory_space<vmem>>, vector<32x32xf32>
    %cst = arith.constant dense<0.000000e+00> : vector<16x32xf32>
    %8 = tpu.matmul %1, %6, %cst {dimension_numbers = #tpu.dot_dimension_numbers<[1], [0], [0], [1], [0, 0, 1, 1], [], []>} : vector<16x32xf32>, vector<32x32xf32>, vector<16x32xf32> -> vector<16x32xf32>
    %9 = vector.shape_cast %8 : vector<16x32xf32> to vector<16x4x8xf32>
    %10 = tpu.transpose %9, [1, 0, 2] : vector<16x4x8xf32> -> vector<4x16x8xf32>
    %11 = vector.shape_cast %3 : vector<16x32xf32> to vector<16x4x8xf32>
    %12 = tpu.transpose %11, [1, 0, 2] : vector<16x4x8xf32> -> vector<4x16x8xf32>
    %13 = vector.shape_cast %5 : vector<16x32xf32> to vector<16x4x8xf32>
    %14 = tpu.transpose %13, [1, 0, 2] : vector<16x4x8xf32> -> vector<4x16x8xf32>
    "tpu.trace_start"() <{level = 10 : i32, message = "hqd,hkd->hqk"}> : () -> ()
    %cst_12 = arith.constant dense<0.000000e+00> : vector<4x16x16xf32>
    %15 = tpu.matmul %10, %12, %cst_12 {dimension_numbers = #tpu.dot_dimension_numbers<[2], [2], [1], [1], [0, 0, 0, 1, 1, 1], [0], [0]>} : vector<4x16x8xf32>, vector<4x16x8xf32>, vector<4x16x16xf32> -> vector<4x16x16xf32>
    "tpu.trace_stop"() : () -> ()
    %cst_13 = arith.constant dense<0xFF800000> : vector<4x16xf32>
    %16 = vector.multi_reduction <maximumf>, %15, %cst_13 [2] : vector<4x16x16xf32> to vector<4x16xf32>
    %17 = vector.shape_cast %16 : vector<4x16xf32> to vector<4x16x1xf32>
    %18 = vector.broadcast %17 : vector<4x16x1xf32> to vector<4x16x16xf32>
    %19 = arith.subf %15, %18 : vector<4x16x16xf32>
    %20 = math.exp %19 : vector<4x16x16xf32>
    %cst_14 = arith.constant dense<0.000000e+00> : vector<4x16xf32>
    %21 = vector.multi_reduction <add>, %20, %cst_14 [2] : vector<4x16x16xf32> to vector<4x16xf32>
    %22 = vector.shape_cast %21 : vector<4x16xf32> to vector<4x16x1xf32>
    "tpu.trace_start"() <{level = 10 : i32, message = "hqk,hkd->hqd"}> : () -> ()
    %cst_15 = arith.constant dense<0.000000e+00> : vector<4x16x8xf32>
    %23 = tpu.matmul %20, %14, %cst_15 {dimension_numbers = #tpu.dot_dimension_numbers<[2], [1], [1], [2], [0, 0, 0, 1, 1, 2], [0], [0]>} : vector<4x16x16xf32>, vector<4x16x8xf32>, vector<4x16x8xf32> -> vector<4x16x8xf32>
    "tpu.trace_stop"() : () -> ()
    %24 = tpu.reciprocal %22 {approx = true} : vector<4x16x1xf32> -> vector<4x16x1xf32>
    %25 = vector.broadcast %24 : vector<4x16x1xf32> to vector<4x16x8xf32>
    %26 = arith.mulf %23, %25 : vector<4x16x8xf32>
    %27 = tpu.transpose %26, [1, 0, 2] : vector<4x16x8xf32> -> vector<16x4x8xf32>
    %28 = vector.shape_cast %27 : vector<16x4x8xf32> to vector<16x32xf32>
    %cst_16 = arith.constant dense<0.000000e+00> : vector<16x32xf32>
    %29 = tpu.matmul %28, %7, %cst_16 {dimension_numbers = #tpu.dot_dimension_numbers<[1], [0], [0], [1], [0, 0, 1, 1], [], []>} : vector<16x32xf32>, vector<32x32xf32>, vector<16x32xf32> -> vector<16x32xf32>
    %c0_17 = arith.constant 0 : index
    %c0_18 = arith.constant 0 : index
    %c0_19 = arith.constant 0 : index
    %30 = vector.load %arg11[%c0_17, %c0_18, %c0_19] : memref<1x16x32xf32, #tpu.memory_space<vmem>>, vector<1x16x32xf32>
    %31 = vector.shape_cast %30 : vector<1x16x32xf32> to vector<16x32xf32>
    %32 = vector.shape_cast %29 : vector<16x32xf32> to vector<1x16x32xf32>
    tpu.vector_store %arg11[%c0_17, %c0_18, %c0_19], %32 {strides = array<i32>} : memref<1x16x32xf32, #tpu.memory_space<vmem>>, vector<1x16x32xf32>,
    %c0_20 = arith.constant 0 : index
    %c0_21 = arith.constant 0 : index
    %c0_22 = arith.constant 0 : index
    %33 = vector.load %arg5[%c0_20, %c0_21, %c0_22] : memref<1x12x32xf32, #tpu.memory_space<vmem>>, vector<1x12x32xf32>
    %34 = vector.shape_cast %33 : vector<1x12x32xf32> to vector<12x32xf32>
    %c0_23 = arith.constant 0 : index
    %c0_24 = arith.constant 0 : index
    %c0_25 = arith.constant 0 : index
    %35 = vector.load %arg6[%c0_23, %c0_24, %c0_25] : memref<1x12x32xf32, #tpu.memory_space<vmem>>, vector<1x12x32xf32>
    %36 = vector.shape_cast %35 : vector<1x12x32xf32> to vector<12x32xf32>
    %c0_26 = arith.constant 0 : index
    %c0_27 = arith.constant 0 : index
    %37 = vector.load %arg9[%c0_26, %c0_27] : memref<32x32xf32, #tpu.memory_space<vmem>>, vector<32x32xf32>
    %c0_28 = arith.constant 0 : index
    %c0_29 = arith.constant 0 : index
    %38 = vector.load %arg10[%c0_28, %c0_29] : memref<32x32xf32, #tpu.memory_space<vmem>>, vector<32x32xf32>
    %cst_30 = arith.constant dense<0.000000e+00> : vector<16x32xf32>
    %39 = tpu.matmul %29, %37, %cst_30 {dimension_numbers = #tpu.dot_dimension_numbers<[1], [0], [0], [1], [0, 0, 1, 1], [], []>} : vector<16x32xf32>, vector<32x32xf32>, vector<16x32xf32> -> vector<16x32xf32>
    %40 = vector.shape_cast %39 : vector<16x32xf32> to vector<16x4x8xf32>
    %41 = tpu.transpose %40, [1, 0, 2] : vector<16x4x8xf32> -> vector<4x16x8xf32>
    %42 = vector.shape_cast %34 : vector<12x32xf32> to vector<12x4x8xf32>
    %43 = tpu.transpose %42, [1, 0, 2] : vector<12x4x8xf32> -> vector<4x12x8xf32>
    %44 = vector.shape_cast %36 : vector<12x32xf32> to vector<12x4x8xf32>
    %45 = tpu.transpose %44, [1, 0, 2] : vector<12x4x8xf32> -> vector<4x12x8xf32>
    "tpu.trace_start"() <{level = 10 : i32, message = "hqd,hkd->hqk"}> : () -> ()
    %cst_31 = arith.constant dense<0.000000e+00> : vector<4x16x12xf32>
    %46 = tpu.matmul %41, %43, %cst_31 {dimension_numbers = #tpu.dot_dimension_numbers<[2], [2], [1], [1], [0, 0, 0, 1, 1, 1], [0], [0]>} : vector<4x16x8xf32>, vector<4x12x8xf32>, vector<4x16x12xf32> -> vector<4x16x12xf32>
    "tpu.trace_stop"() : () -> ()
    %cst_32 = arith.constant dense<0xFF800000> : vector<4x16xf32>
    %47 = vector.multi_reduction <maximumf>, %46, %cst_32 [2] : vector<4x16x12xf32> to vector<4x16xf32>
    %48 = vector.shape_cast %47 : vector<4x16xf32> to vector<4x16x1xf32>
    %49 = vector.broadcast %48 : vector<4x16x1xf32> to vector<4x16x12xf32>
    %50 = arith.subf %46, %49 : vector<4x16x12xf32>
    %51 = math.exp %50 : vector<4x16x12xf32>
    %cst_33 = arith.constant dense<0.000000e+00> : vector<4x16xf32>
    %52 = vector.multi_reduction <add>, %51, %cst_33 [2] : vector<4x16x12xf32> to vector<4x16xf32>
    %53 = vector.shape_cast %52 : vector<4x16xf32> to vector<4x16x1xf32>
    "tpu.trace_start"() <{level = 10 : i32, message = "hqk,hkd->hqd"}> : () -> ()
    %cst_34 = arith.constant dense<0.000000e+00> : vector<4x16x8xf32>
    %54 = tpu.matmul %51, %45, %cst_34 {dimension_numbers = #tpu.dot_dimension_numbers<[2], [1], [1], [2], [0, 0, 0, 1, 1, 2], [0], [0]>} : vector<4x16x12xf32>, vector<4x12x8xf32>, vector<4x16x8xf32> -> vector<4x16x8xf32>
    "tpu.trace_stop"() : () -> ()
    %55 = tpu.reciprocal %53 {approx = true} : vector<4x16x1xf32> -> vector<4x16x1xf32>
    %56 = vector.broadcast %55 : vector<4x16x1xf32> to vector<4x16x8xf32>
    %57 = arith.mulf %54, %56 : vector<4x16x8xf32>
    %58 = tpu.transpose %57, [1, 0, 2] : vector<4x16x8xf32> -> vector<16x4x8xf32>
    %59 = vector.shape_cast %58 : vector<16x4x8xf32> to vector<16x32xf32>
    %cst_35 = arith.constant dense<0.000000e+00> : vector<16x32xf32>
    %60 = tpu.matmul %59, %38, %cst_35 {dimension_numbers = #tpu.dot_dimension_numbers<[1], [0], [0], [1], [0, 0, 1, 1], [], []>} : vector<16x32xf32>, vector<32x32xf32>, vector<16x32xf32> -> vector<16x32xf32>
    %c0_36 = arith.constant 0 : index
    %c0_37 = arith.constant 0 : index
    %c0_38 = arith.constant 0 : index
    %61 = vector.load %arg12[%c0_36, %c0_37, %c0_38] : memref<1x16x32xf32, #tpu.memory_space<vmem>>, vector<1x16x32xf32>
    %62 = vector.shape_cast %61 : vector<1x16x32xf32> to vector<16x32xf32>
    %63 = vector.shape_cast %60 : vector<16x32xf32> to vector<1x16x32xf32>
    tpu.vector_store %arg12[%c0_36, %c0_37, %c0_38], %63 {strides = array<i32>} : memref<1x16x32xf32, #tpu.memory_space<vmem>>, vector<1x16x32xf32>,
    return
  }
  func.func @transform_0(%arg0: i32, %arg1: i32) -> (i32, i32, i32) {
    %c0_i32 = arith.constant 0 : i32
    %c0_i32_0 = arith.constant 0 : i32
    return %arg0, %arg1, %c0_i32 : i32, i32, i32
  }
  func.func @transform_1(%arg0: i32, %arg1: i32) -> (i32, i32, i32) {
    %c0_i32 = arith.constant 0 : i32
    %c0_i32_0 = arith.constant 0 : i32
    %c0_i32_1 = arith.constant 0 : i32
    return %arg0, %c0_i32, %c0_i32_0 : i32, i32, i32
  }
  func.func @transform_2(%arg0: i32, %arg1: i32) -> (i32, i32, i32) {
    %c0_i32 = arith.constant 0 : i32
    %c0_i32_0 = arith.constant 0 : i32
    %c0_i32_1 = arith.constant 0 : i32
    return %arg0, %c0_i32, %c0_i32_0 : i32, i32, i32
  }
  func.func @transform_3(%arg0: i32, %arg1: i32) -> (i32, i32, i32) {
    %c0_i32 = arith.constant 0 : i32
    %c0_i32_0 = arith.constant 0 : i32
    %c0_i32_1 = arith.constant 0 : i32
    return %arg0, %c0_i32, %c0_i32_0 : i32, i32, i32
  }
  func.func @transform_4(%arg0: i32, %arg1: i32) -> (i32, i32, i32) {
    %c0_i32 = arith.constant 0 : i32
    %c0_i32_0 = arith.constant 0 : i32
    %c0_i32_1 = arith.constant 0 : i32
    return %arg0, %c0_i32, %c0_i32_0 : i32, i32, i32
  }
  func.func @transform_5(%arg0: i32, %arg1: i32) -> (i32, i32) {
    %c0_i32 = arith.constant 0 : i32
    %c0_i32_0 = arith.constant 0 : i32
    %c0_i32_1 = arith.constant 0 : i32
    return %c0_i32, %c0_i32_0 : i32, i32
  }
  func.func @transform_6(%arg0: i32, %arg1: i32) -> (i32, i32) {
    %c0_i32 = arith.constant 0 : i32
    %c0_i32_0 = arith.constant 0 : i32
    %c0_i32_1 = arith.constant 0 : i32
    return %c0_i32, %c0_i32_0 : i32, i32
  }
  func.func @transform_7(%arg0: i32, %arg1: i32) -> (i32, i32) {
    %c0_i32 = arith.constant 0 : i32
    %c0_i32_0 = arith.constant 0 : i32
    %c0_i32_1 = arith.constant 0 : i32
    return %c0_i32, %c0_i32_0 : i32, i32
  }
  func.func @transform_8(%arg0: i32, %arg1: i32) -> (i32, i32) {
    %c0_i32 = arith.constant 0 : i32
    %c0_i32_0 = arith.constant 0 : i32
    %c0_i32_1 = arith.constant 0 : i32
    return %c0_i32, %c0_i32_0 : i32, i32
  }
  func.func @transform_9(%arg0: i32, %arg1: i32) -> (i32, i32, i32) {
    %c0_i32 = arith.constant 0 : i32
    %c0_i32_0 = arith.constant 0 : i32
    return %arg0, %arg1, %c0_i32 : i32, i32, i32
  }
  func.func @transform_10(%arg0: i32, %arg1: i32) -> (i32, i32, i32) {
    %c0_i32 = arith.constant 0 : i32
    %c0_i32_0 = arith.constant 0 : i32
    return %arg0, %arg1, %c0_i32 : i32, i32, i32
  }
}

</mosaic_0001>

<bundles_post_ra>
// kernel: tpu_custom_call.1
= control target key start
LH: loop header
LB: loop body
LE: loop exit
PB: predicated region body
PF: predicated region fallthrough
CT: control target
= control target key end

     0   :  { %s7450_s0 = inlined_call_operand.hbm [shape: f32[2,32,32], index: 0, kind: input, shape index: {}]   ;;  %s7451_s1 = inlined_call_operand.hbm [shape: f32[2,16,32], index: 1, kind: input, shape index: {}]   ;;  %s7452_s2 = inlined_call_operand.hbm [shape: f32[2,16,32], index: 2, kind: input, shape index: {}]   ;;  %s7453_s3 = inlined_call_operand.hbm [shape: f32[2,12,32], index: 3, kind: input, shape index: {}]   ;;  %s7454_s4 = inlined_call_operand.hbm [shape: f32[2,12,32], index: 4, kind: input, shape index: {}]   ;;  %s7455_s5 = inlined_call_operand.hbm [shape: f32[32,32], index: 5, kind: input, shape index: {}]   ;;  %s7456_s6 = inlined_call_operand.hbm [shape: f32[32,32], index: 6, kind: input, shape index: {}]   ;;  %s7457_s7 = inlined_call_operand.hbm [shape: f32[32,32], index: 7, kind: input, shape index: {}]   ;;  %s7458_s8 = inlined_call_operand.hbm [shape: f32[32,32], index: 8, kind: input, shape index: {}]   ;;  %s7459_s9 = inlined_call_operand.hbm [shape: f32[2,32,32], index: 9, kind: output, shape index: {0}]   ;;  %s7460_s10 = inlined_call_operand.hbm [shape: f32[2,32,32], index: 10, kind: output, shape index: {1}]  }
   0x1   :  { %7504 = sst [smem:[#allocation42_spill]] %s7450_s0 }
   0x2   :  { %7505 = sst [smem:[#allocation43_spill]] %s7451_s1 }
   0x3   :  { %7506 = sst [smem:[#allocation44_spill]] %s7452_s2 }
   0x4   :  { %7507 = sst [smem:[#allocation45_spill]] %s7453_s3 }
   0x5   :  { %7508 = sst [smem:[#allocation46_spill]] %s7454_s4 }
   0x6   :  { %7509 = sst [smem:[#allocation47_spill]] %s7455_s5 }
   0x7   :  { %7510 = sst [smem:[#allocation48_spill]] %s7456_s6 }
   0x8   :  { %7511 = sst [smem:[#allocation49_spill]] %s7457_s7 }
   0x9   :  { %7512 = sst [smem:[#allocation50_spill]] %s7458_s8 }
   0xa   :  { %7513 = sst [smem:[#allocation51_spill]] %s7459_s9 }
   0xb   :  { %7514 = sst [smem:[#allocation52_spill]] %s7460_s10 }
   0xc   :  { %16 = vsyncpa [#allocation3], 0 }
   0xd   :  { %18 = vsyncpa [#allocation3 + $0x1], 0 }
   0xe   :  { %19 = vsyncpa [#allocation6], 0 }
   0xf   :  { %21 = vsyncpa [#allocation6 + $0x1], 0 }
  0x10   :  { %22 = vsyncpa [#allocation9], 0 }
  0x11   :  { %24 = vsyncpa [#allocation9 + $0x1], 0 }
  0x12   :  { %25 = vsyncpa [#allocation12], 0 }
  0x13   :  { %26 = vsyncpa [#allocation15], 0 }
  0x14   :  { %27 = vsyncpa [#allocation4], 0 }
  0x15   :  { %29 = vsyncpa [#allocation4 + $0x1], 0 }
  0x16   :  { %30 = vsyncpa [#allocation19], 0 }
  0x17   :  { %32 = vsyncpa [#allocation19 + $0x1], 0  ;;  %s6286_s13 = smov 0   ;;  %s6288_s14 = smov 0  }
  0x18   :  { %s6290_s15 = smov 0   ;;  %s6292_s16 = smov 0  }
  0x19   :  { %s6294_s17 = smov 0   ;;  %s6296_s18 = smov 0  }
  0x1a   :  { %s6298_s19 = smov 0   ;;  %s6300_s20 = smov 0  }
  0x1b   :  { %s6302_s21 = smov 0   ;;  %s6304_s22 = smov 0  }
  0x1c   :  { %s6306_s23 = smov 0  }
  0x1d LB: > { %7515 = sst [smem:[#allocation27_spill]] %s6169_s14  ;;  %s6340_s24 = sadd.s32 4294967295, %s6205_s23   ;;  %s6205_s23 = sphi %s6306_s23, %s38_s23   ;;  %s6201_s22 = sphi %s6304_s22, %s7602_s22   ;;  %s6197_s21 = sphi %s6302_s21, %s7601_s21   ;;  %s6193_s20 = sphi %s6300_s20, %s7600_s20   ;;  %s6189_s19 = sphi %s6298_s19, %s7599_s19   ;;  %s6185_s18 = sphi %s6296_s18, %s7598_s18   ;;  %s6181_s17 = sphi %s6294_s17, %s7597_s17   ;;  %s6177_s16 = sphi %s6292_s16, %s7592_s16   ;;  %s6173_s15 = sphi %s6290_s15, %s7596_s15   ;;  %s6169_s14 = sphi %s6288_s14, %s7595_s14   ;;  %s6165_s13 = sphi %s6286_s13, %s7591_s13  }
  0x1e   : > { %7516 = sst [smem:[#allocation28_spill]] %s6177_s16  ;;  %p98_p0 = scmp.ne.s32.totalorder %s6169_s14, %s6165_s13 }
  0x1f   : > { %7517 = sst [smem:[#allocation29_spill]] %s6181_s17  ;;  %p7463_p1 = scmp.eq.s32.totalorder %s6340_s24, 0 }
  0x20   : > { %7518 = sst [smem:[#allocation30_spill]] %s6189_s19  ;;  %p5026_p3 = scmp.ge.s32.totalorder %s6205_s23, 1 }
  0x21   : > { %7519 = sst [smem:[#allocation31_spill]] %s6193_s20  ;;  %p327_p4 = scmp.lt.s32.totalorder %s6205_s23, 5 }
  0x22   : > { %7520 = sst [smem:[#allocation32_spill]] %s6340_s24  ;;  %p6349_p5 = por %p98_p0, %p7463_p1 }
  0x23   : > { %p6353_p6 = pnand %p5026_p3, %p327_p4  ;;  %s6207_s27 = smov [#allocation11]  }
  0x24   : > { %s7521_s25 = scalar_select %p6349_p5, 1, 0 }
  0x25   : > { %s7523_s26 = scalar_select %p6353_p6, 1, 0 }
  0x26   : > { %7522 = sst [smem:[#allocation33_spill]] %s7521_s25  ;;  %s339_s28 = sshll.u32 %s6207_s27, 4  ;;  %s340_s28 = int_to_ptr.vmem [resolvable:$true] %s339_s28 }
  0x27   : > { %7524 = sst [smem:[#allocation34_spill]] %s7523_s26  ;;  %p5558_p7 = pneg %p6353_p6 }
  0x28   : > { %s6208_s30 = smov [#allocation14]   ;;  %s7526_s5 = sld [smem:[#allocation47_spill]] }
  0x29   : > { %p6361_p8 = pnand %p5558_p7, %p7463_p1  ;;  %s365_s11 = sshll.u32 %s6208_s30, 4  ;;  %s6365_s11 = int_to_ptr.vmem [resolvable:$true] %s365_s11 }
  0x2b   : > { %s7525_s29 = scalar_select %p6361_p8, 1, 0 }
  0x2c   : > { %p6375_p10 = pneg %p6361_p8 }
  0x2e   : > { %s5773_s10 = scalar_lea.hbm %s7526_s5, 512 }
  0x2f   : > { %p5774_p9 = scmp.ne.s32.totalorder %s7526_s5, %s5773_s10  ;;  %p5780_p13 = scmp.lt.u32.totalorder %s5773_s10, %s7526_s5 }
  0x30   : > { %s7527_s27 = scalar_select %p6375_p10, 1, 0 }
  0x31   : > { %p5776_p11 = pnand %p6375_p10, %p5774_p9 }
  0x33   : > { %p5777_p12 = pneg %p5776_p11 }
  0x35   : > { %p5782_p0 = pnand %p5780_p13, %p5777_p12 }
  0x37   : > { %5785 = shalt.err (!%p5782_p0)
}
  0x38   : > { %s5786_s12 = scalar_lea.vmem %s340_s28, 512  ;;  %p5794_p1 = scmp.lt.s32.totalorder %s340_s28, %s340_s28 }
  0x39   : > { %p5787_p3 = scmp.ne.s32.totalorder %s340_s28, %s5786_s12  ;;  %p5795_p2 = scmp.lt.s32.totalorder %s5786_s12, %s5786_s12 }
  0x3b   : > { %p5789_p4 = pnand %p5787_p3, %p6375_p10  ;;  %p5796_p5 = por %p5795_p2, %p5794_p1 }
  0x3d   : > { %p5790_p7 = pneg %p5789_p4 }
  0x3f   : > { %p5797_p6 = pnand %p5796_p5, %p5790_p7 }
  0x41   : > { %5800 = shalt.err (!%p5797_p6)
}
  0x42   : > { %s7471_s9 = smov 128   ;;  %s7473_s20 = smov 8  }
  0x43   : > { %5561 = dma.hbm_to_vmem [thread:$0]  (!%p6361_p8), %s7526_s5, 512, %s340_s28, [#allocation12], %s7471_s9, %s7471_s9, %s7473_s20  }
  0x44   : > { %s7528_s7 = sld [smem:[#allocation49_spill]] }
  0x4a   : > { %s5801_s25 = scalar_lea.hbm %s7528_s7, 512 }
  0x4b   : > { %p5802_p1 = scmp.ne.s32.totalorder %s7528_s7, %s5801_s25  ;;  %p5808_p6 = scmp.lt.u32.totalorder %s5801_s25, %s7528_s7 }
  0x4d   : > { %p5804_p2 = pnand %p5802_p1, %p6375_p10 }
  0x4f   : > { %p5805_p5 = pneg %p5804_p2 }
  0x51   : > { %p5810_p9 = pnand %p5808_p6, %p5805_p5 }
  0x53   : > { %5813 = shalt.err (!%p5810_p9)
}
  0x54   : > { %s5814_s28 = scalar_lea.vmem %s6365_s11, 512  ;;  %p5822_p0 = scmp.lt.s32.totalorder %s6365_s11, %s6365_s11 }
  0x55   : > { %p5815_p11 = scmp.ne.s32.totalorder %s6365_s11, %s5814_s28  ;;  %p5823_p3 = scmp.lt.s32.totalorder %s5814_s28, %s5814_s28 }
  0x57   : > { %p5817_p12 = pnand %p5815_p11, %p6375_p10  ;;  %p5824_p4 = por %p5823_p3, %p5822_p0 }
  0x59   : > { %p5818_p13 = pneg %p5817_p12 }
  0x5b   : > { %p5825_p7 = pnand %p5824_p4, %p5818_p13 }
  0x5d   : > { %5828 = shalt.err (!%p5825_p7)
}
  0x5e   : > { %5567 = dma.hbm_to_vmem [thread:$0]  (!%p6361_p8), %s7528_s7, 512, %s6365_s11, [#allocation15], %s7471_s9, %s7471_s9, %s7473_s20  }
  0x5f   : > { %p7477_p1 = scmp.eq.s32.totalorder %s6205_s23, 0  ;;  %p92_p2 = scmp.ne.s32.totalorder %s6173_s15, %s6169_s14 }
  0x60   : > { %p7475_p5 = scmp.lt.s32.totalorder %s6205_s23, 4  ;;  %s7476_s26 = sand.u32 1, %s6205_s23  }
  0x61   : > { %p94_p6 = por %p92_p2, %p7477_p1  ;;  %s417_s10 = sand.u32 1, %s6173_s15  }
  0x62   : > { %s6430_s19 = sshll.u32 %s6201_s22, 8  ;;  %s6432_s13 = sshll.u32 %s417_s10, 4 }
  0x63   : > { %7529 = sst [smem:[#allocation35_spill]] %s6432_s13  ;;  %s7530_s1 = sld [smem:[#allocation43_spill]] }
  0x64   : > { %p6442_p9 = pnand %p7475_p5, %p94_p6  ;;  %s419_s2 = scalar_lea.vmem [#allocation5], %s6432_s13 }
  0x65   : > { %s426_s4 = sshll.u32 %s419_s2, 4  ;;  %s6451_s10 = scalar_lea.sflag [#allocation6], %s7476_s26  ;;  %s6447_s4 = int_to_ptr.vmem [resolvable:$true] %s426_s4 }
  0x66   : > { %s7531_s11 = scalar_select %p6442_p9, 1, 0 }
  0x67   : > { %7532 = sst [smem:[#allocation36_spill]] %s6451_s10  ;;  %p6457_p12 = pneg %p6442_p9 }
  0x69   : > { %s6438_s28 = scalar_lea.hbm %s7530_s1, %s6430_s19  ;;  %s5834_s2 = scalar_lea.hbm %s7530_s1, 512 }
  0x6a   : > { %s5829_s30 = scalar_lea.hbm %s6438_s28, 256  ;;  %p5835_p3 = scmp.lt.u32.totalorder %s6438_s28, %s7530_s1 }
  0x6b   : > { %p5830_p11 = scmp.ne.s32.totalorder %s6438_s28, %s5829_s30  ;;  %p5836_p4 = scmp.lt.u32.totalorder %s5834_s2, %s5829_s30 }
  0x6c   : > { %s7533_s12 = scalar_select %p6457_p12, 1, 0 }
  0x6d   : > { %p5832_p13 = pnand %p6457_p12, %p5830_p11  ;;  %p5837_p7 = por %p5836_p4, %p5835_p3 }
  0x6e   : > { %p5838_p2 = scmp.lt.u32.totalorder %s5829_s30, %s6438_s28 }
  0x6f   : > { %p5833_p0 = pneg %p5832_p13 }
  0x70   : > { %p5839_p6 = por %p5838_p2, %p5837_p7 }
  0x72   : > { %p5840_p5 = pnand %p5839_p6, %p5833_p0 }
  0x74   : > { %5843 = shalt.err (!%p5840_p5)
}
  0x75   : > { %s5844_s26 = scalar_lea.vmem %s6447_s4, 256  ;;  %s6211_s9 = smov [#allocation5]  }
  0x76   : > { %p5845_p11 = scmp.ne.s32.totalorder %s6447_s4, %s5844_s26  ;;  %s5849_s25 = sshll.u32 %s6211_s9, 4  ;;  %s5850_s25 = int_to_ptr.vmem [resolvable:$false] %s5849_s25 }
  0x77   : > { %s5851_s5 = scalar_lea.vmem %s5850_s25, 512  ;;  %p5852_p8 = scmp.lt.s32.totalorder %s6447_s4, %s5850_s25 }
  0x78   : > { %p5847_p13 = pnand %p5845_p11, %p6457_p12  ;;  %p5853_p10 = scmp.lt.s32.totalorder %s5851_s5, %s5844_s26 }
  0x7a   : > { %p5848_p1 = pneg %p5847_p13  ;;  %p5854_p3 = por %p5853_p10, %p5852_p8 }
  0x7c   : > { %p5855_p4 = pnand %p5854_p3, %p5848_p1 }
  0x7e   : > { %5858 = shalt.err (!%p5855_p4)
}
  0x7f   : > { %s7534_s20 = smov 8   ;;  %s7535_s30 = smov 128  }
  0x80   : > { %5577 = dma.hbm_to_vmem [thread:$0]  (!%p6442_p9), %s6438_s28, 256, %s6447_s4, %s6451_s10, %s7535_s30, %s7535_s30, %s7534_s20  }
  0x81   : > { %s7536_s3 = sld [smem:[#allocation45_spill]]  ;;  %s461_s25 = scalar_lea.vmem [#allocation8], %s6432_s13 }
  0x82   : > { %s468_s5 = sshll.u32 %s461_s25, 4  ;;  %s6212_s1 = smov [#allocation13]   ;;  %s6491_s5 = int_to_ptr.vmem [resolvable:$true] %s468_s5 }
  0x83   : > { %s6493_s7 = sshll.u32 %s6212_s1, 4  ;;  %s7537_s14 = sand.u32 1, %s6205_s23   ;;  %s353_s7 = int_to_ptr.vmem [resolvable:$true] %s6493_s7 }
  0x84   : > { %s6497_s0 = scalar_lea.sflag [#allocation9], %s7537_s14 }
  0x87   : > { %s6488_s26 = scalar_lea.hbm %s7536_s3, %s6430_s19  ;;  %s5864_s9 = scalar_lea.hbm %s7536_s3, 512 }
  0x88   : > { %s5859_s28 = scalar_lea.hbm %s6488_s26, 256  ;;  %p5865_p5 = scmp.lt.u32.totalorder %s6488_s26, %s7536_s3 }
  0x89   : > { %p5860_p8 = scmp.ne.s32.totalorder %s6488_s26, %s5859_s28  ;;  %p5866_p0 = scmp.lt.u32.totalorder %s5864_s9, %s5859_s28 }
  0x8a   : > { %p5868_p2 = scmp.lt.u32.totalorder %s5859_s28, %s6488_s26 }
  0x8b   : > { %p5862_p10 = pnand %p5860_p8, %p6457_p12  ;;  %p5867_p7 = por %p5866_p0, %p5865_p5 }
  0x8d   : > { %p5863_p1 = pneg %p5862_p10  ;;  %p5869_p6 = por %p5868_p2, %p5867_p7 }
  0x8f   : > { %p5870_p11 = pnand %p5869_p6, %p5863_p1 }
  0x91   : > { %5873 = shalt.err (!%p5870_p11)
}
  0x92   : > { %s5874_s1 = scalar_lea.vmem %s6491_s5, 256  ;;  %s6213_s14 = smov [#allocation8]  }
  0x93   : > { %p5875_p13 = scmp.ne.s32.totalorder %s6491_s5, %s5874_s1  ;;  %s5879_s25 = sshll.u32 %s6213_s14, 4  ;;  %s5880_s25 = int_to_ptr.vmem [resolvable:$false] %s5879_s25 }
  0x94   : > { %s5881_s13 = scalar_lea.vmem %s5880_s25, 512  ;;  %p5882_p8 = scmp.lt.s32.totalorder %s6491_s5, %s5880_s25 }
  0x95   : > { %p5877_p3 = pnand %p5875_p13, %p6457_p12  ;;  %p5883_p10 = scmp.lt.s32.totalorder %s5881_s13, %s5874_s1 }
  0x97   : > { %p5878_p4 = pneg %p5877_p3  ;;  %p5884_p5 = por %p5883_p10, %p5882_p8 }
  0x99   : > { %p5885_p0 = pnand %p5884_p5, %p5878_p4 }
  0x9b   : > { %5888 = shalt.err (!%p5885_p0)
}
  0x9c   : > { %5583 = dma.hbm_to_vmem [thread:$0]  (!%p6442_p9), %s6488_s26, 256, %s6491_s5, %s6497_s0, %s7535_s30, %s7535_s30, %s7534_s20  }
  0x9d   : > { %s7538_s6 = sld [smem:[#allocation48_spill]]  ;;  %p7539_p7 = scmp.ne.s32.totalorder %s7527_s27, 0 }
  0xa3   : > { %s5889_s4 = scalar_lea.hbm %s7538_s6, 512 }
  0xa4   : > { %p5890_p1 = scmp.ne.s32.totalorder %s7538_s6, %s5889_s4  ;;  %p5896_p11 = scmp.lt.u32.totalorder %s5889_s4, %s7538_s6 }
  0xa6   : > { %p5892_p2 = pnand %p5890_p1, %p7539_p7 }
  0xa8   : > { %p5893_p6 = pneg %p5892_p2 }
  0xaa   : > { %p5898_p13 = pnand %p5896_p11, %p5893_p6 }
  0xac   : > { %5901 = shalt.err (!%p5898_p13)
}
  0xad   : > { %s5902_s25 = scalar_lea.vmem %s353_s7, 512  ;;  %p5910_p10 = scmp.lt.s32.totalorder %s353_s7, %s353_s7 }
  0xae   : > { %p5903_p3 = scmp.ne.s32.totalorder %s353_s7, %s5902_s25  ;;  %p5911_p5 = scmp.lt.s32.totalorder %s5902_s25, %s5902_s25 }
  0xb0   : > { %p5905_p4 = pnand %p5903_p3, %p7539_p7  ;;  %p5912_p0 = por %p5911_p5, %p5910_p10 }
  0xb2   : > { %p5906_p8 = pneg %p5905_p4 }
  0xb4   : > { %p5913_p9 = pnand %p5912_p0, %p5906_p8 }
  0xb6   : > { %5916 = shalt.err (!%p5913_p9)
}
  0xb7   : > { %p7540_p1 = scmp.ne.s32.totalorder %s7525_s29, 0  ;;  %s6214_s13 = smov [#allocation16]  }
  0xb8   : > { %s378_s10 = sshll.u32 %s6214_s13, 4  ;;  %s7541_s8 = sld [smem:[#allocation50_spill]]  ;;  %s379_s10 = int_to_ptr.vmem [resolvable:$true] %s378_s10 }
  0xb9   : > { %5564 = dma.hbm_to_vmem [thread:$0]  (!%p7540_p1), %s7538_s6, 512, %s353_s7, [#allocation12], %s7535_s30, %s7535_s30, %s7534_s20  }
  0xbe   : > { %s5917_s2 = scalar_lea.hbm %s7541_s8, 512 }
  0xbf   : > { %p5918_p9 = scmp.ne.s32.totalorder %s7541_s8, %s5917_s2  ;;  %p5924_p11 = scmp.lt.u32.totalorder %s5917_s2, %s7541_s8 }
  0xc1   : > { %p5920_p2 = pnand %p5918_p9, %p7539_p7 }
  0xc3   : > { %p5921_p6 = pneg %p5920_p2 }
  0xc5   : > { %p5926_p13 = pnand %p5924_p11, %p5921_p6 }
  0xc7   : > { %5929 = shalt.err (!%p5926_p13)
}
  0xc8   : > { %s5930_s7 = scalar_lea.vmem %s379_s10, 512  ;;  %p5938_p10 = scmp.lt.s32.totalorder %s379_s10, %s379_s10 }
  0xc9   : > { %p5931_p3 = scmp.ne.s32.totalorder %s379_s10, %s5930_s7  ;;  %p5939_p5 = scmp.lt.s32.totalorder %s5930_s7, %s5930_s7 }
  0xcb   : > { %p5933_p4 = pnand %p5931_p3, %p7539_p7  ;;  %p5940_p0 = por %p5939_p5, %p5938_p10 }
  0xcd   : > { %p5934_p8 = pneg %p5933_p4 }
  0xcf   : > { %p5941_p12 = pnand %p5940_p0, %p5934_p8 }
  0xd1   : > { %5944 = shalt.err (!%p5941_p12)
}
  0xd2   : > { %5570 = dma.hbm_to_vmem [thread:$0]  (!%p7540_p1), %s7541_s8, 512, %s379_s10, [#allocation15], %s7535_s30, %s7535_s30, %s7534_s20  }
  0xd3   : > { %s5025_s29 = sadd.s32 4294967294, %s6205_s23   ;;  %s47_s27 = sadd.s32 1, %s6197_s21 }
  0xd4   : > { %p48_p12 = scmp.ge.s32.totalorder %s47_s27, 2  ;;  %s50_s13 = sadd.s32 1, %s6201_s22 }
  0xd5   : > { %s59_s28 = sadd.s32 1, %s6185_s18  ;;  %p66_p7 = scmp.ne.s32.totalorder %s6185_s18, %s6181_s17 }
  0xd6   : > { %s7604_s27 = smov (%p48_p12, %s47_s27), 0  ;;  %s7606_s13 = smov (!%p48_p12, %s50_s13), %s6201_s22 }
  0xd7   : > { %7542 = sst [smem:[#allocation37_spill]] %s7604_s27  ;;  %s55_s4 = ssub.s32 %s6197_s21, %s7604_s27 }
  0xd8   : > { %p7543_p9 = scmp.eq.s32.totalorder %s6205_s23, 0  ;;  %p52_p1 = scmp.ge.s32.totalorder %s7606_s13, 2 }
  0xd9   : > { %p72_p6 = scmp.ne.s32.totalorder %s6181_s17, %s6177_s16  ;;  %p7545_p11 = scmp.eq.s32.totalorder %s6340_s24, 3 }
  0xda   : > { %p6580_p2 = por %p7543_p9, %p66_p7  ;;  %p292_p3 = scmp.eq.s32.totalorder %s5025_s29, 3 }
  0xdb   : > { %p6588_p13 = por %p7545_p11, %p66_p7  ;;  %s7608_s13 = smov (%p52_p1, %s7606_s13), 0 }
  0xdc   : > { %7548 = sst [smem:[#allocation39_spill]] %s7608_s13  ;;  %p7549_p4 = scmp.eq.s32.totalorder %s6340_s24, 0 }
  0xdd   : > { %s7546_s2 = scalar_select %p6588_p13, 1, 0 }
  0xde   : > { %p6596_p8 = por %p7549_p4, %p72_p6  ;;  %p6600_p10 = por %p292_p3, %p72_p6 }
  0xdf   : > { %7547 = sst [smem:[#allocation38_spill]] %s7546_s2  ;;  %s54_s14 = ssub.s32 %s6201_s22, %s7608_s13 }
  0xe0   : > { %s7550_s9 = scalar_select %p6596_p8, 1, 0 }
  0xe1   : > { %s7552_s1 = scalar_select %p6600_p10, 1, 0 }
  0xe2   : > { %7551 = sst [smem:[#allocation40_spill]] %s7550_s9  ;;  %s392_s25 = sand.u32 1, %s6185_s18  }
  0xe3   : > { %7553 = sst [smem:[#allocation41_spill]] %s7552_s1  ;;  %s56_s7 = sor.u32 %s55_s4, %s54_s14 }
  0xe4   : > { %s7554_s26 = sld [smem:[#allocation35_spill]]  ;;  %p83_p5 = scmp.eq.s32.totalorder %s54_s14, 0 }
  0xe5   : > { %p57_p0 = scmp.eq.s32.totalorder %s56_s7, 0  ;;  %s7555_s5 = sadd.s32 1, %s6173_s15 }
  0xe6   : > { %s6610_s29 = scalar_select %p83_p5, %s6173_s15, %s7555_s5  }
  0xe7   : > { %s6613_s3 = scalar_select %p57_p0, %s6185_s18, %s59_s28  }
  0xe8   : > { %s5032_s6 = sshll.u32 %s392_s25, 4  ;;  %s5033_s8 = sshll.u32 %s6197_s21, 1 }
  0xe9   : > { %s5034_s27 = sshll.u32 %s6201_s22, 2  ;;  %s396_s2 = scalar_lea.vmem [#allocation2], %s5032_s6 }
  0xea   : > { %s402_s16 = sadd.s32 %s5034_s27, %s5033_s8  ;;  %s405_s1 = sshll.u32 %s396_s2, 4  ;;  %s6617_s1 = int_to_ptr.vmem [resolvable:$true] %s405_s1 }
  0xeb   : > { %s5035_s13 = sshll.u32 %s402_s16, 7  ;;  %s7556_s4 = sld [smem:[#allocation42_spill]] }
  0xec   : > { %p7557_p12 = scmp.lt.s32.totalorder %s6205_s23, 4  ;;  %s7559_s16 = sld [smem:[#allocation44_spill]] }
  0xed   : > { %s440_s24 = scalar_lea.vmem [#allocation7], %s7554_s26  ;;  %s6641_s10 = scalar_lea.sflag [#allocation3], %s392_s25 }
  0xee   : > { %p6628_p7 = pnand %p7557_p12, %p6580_p2 }
  0xf0   : > { %p5947_p1 = pneg %p6628_p7 }
  0xf1   : > { %s6622_s17 = scalar_lea.hbm %s7556_s4, %s5035_s13  ;;  %s6639_s13 = sshll.u32 %s440_s24, 4  ;;  %s6673_s13 = int_to_ptr.vmem [resolvable:$true] %s6639_s13 }
  0xf2   : > { %s7560_s27 = smov %s7559_s16  ;;  %s6636_s2 = scalar_lea.hbm %s7559_s16, %s6430_s19 }
  0xf3   : > { %s5945_s9 = scalar_lea.hbm %s6622_s17, 256  ;;  %s5950_s5 = scalar_lea.hbm %s7556_s4, 1024 }
  0xf4   : > { %p5946_p9 = scmp.ne.s32.totalorder %s6622_s17, %s5945_s9  ;;  %p5951_p11 = scmp.lt.u32.totalorder %s6622_s17, %s7556_s4 }
  0xf5   : > { %p5952_p3 = scmp.lt.u32.totalorder %s5950_s5, %s5945_s9  ;;  %p5954_p5 = scmp.lt.u32.totalorder %s5945_s9, %s6622_s17 }
  0xf6   : > { %p5948_p2 = pnand %p5947_p1, %p5946_p9 }
  0xf7   : > { %p5953_p4 = por %p5952_p3, %p5951_p11 }
  0xf8   : > { %p5949_p6 = pneg %p5948_p2 }
  0xf9   : > { %p5955_p0 = por %p5954_p5, %p5953_p4 }
  0xfb   : > { %p5956_p12 = pnand %p5955_p0, %p5949_p6 }
  0xfd   : > { %5959 = shalt.err (!%p5956_p12)
}
  0xfe   : > { %s5960_s25 = scalar_lea.vmem %s6617_s1, 256  ;;  %s6215_s16 = smov [#allocation2]  }
  0xff   : > { %p5961_p9 = scmp.ne.s32.totalorder %s6617_s1, %s5960_s25  ;;  %s5965_s24 = sshll.u32 %s6215_s16, 4  ;;  %s5966_s24 = int_to_ptr.vmem [resolvable:$false] %s5965_s24 }
 0x100   : > { %s5967_s14 = scalar_lea.vmem %s5966_s24, 512  ;;  %p5968_p13 = scmp.lt.s32.totalorder %s6617_s1, %s5966_s24 }
 0x101   : > { %p5963_p2 = pnand %p5961_p9, %p5947_p1  ;;  %p5969_p11 = scmp.lt.s32.totalorder %s5967_s14, %s5960_s25 }
 0x103   : > { %p5964_p10 = pneg %p5963_p2  ;;  %p5970_p3 = por %p5969_p11, %p5968_p13 }
 0x105   : > { %p5971_p4 = pnand %p5970_p3, %p5964_p10 }
 0x107   : > { %5974 = shalt.err (!%p5971_p4)
}
 0x108   : > { %5574 = dma.hbm_to_vmem [thread:$0]  (!%p6628_p7), %s6622_s17, 256, %s6617_s1, %s6641_s10, %s7535_s30, %s7535_s30, %s7534_s20  }
 0x109   : > { %s5975_s9 = scalar_lea.hbm %s6636_s2, 256  ;;  %p7561_p10 = scmp.ne.s32.totalorder %s7533_s12, 0 }
 0x10a   : > { %p5976_p13 = scmp.ne.s32.totalorder %s6636_s2, %s5975_s9  ;;  %s5980_s5 = scalar_lea.hbm %s7560_s27, 512 }
 0x10b   : > { %p5981_p5 = scmp.lt.u32.totalorder %s6636_s2, %s7560_s27  ;;  %p5982_p0 = scmp.lt.u32.totalorder %s5980_s5, %s5975_s9 }
 0x10c   : > { %p5978_p1 = pnand %p5976_p13, %p7561_p10  ;;  %p5984_p9 = scmp.lt.u32.totalorder %s5975_s9, %s6636_s2 }
 0x10d   : > { %p5983_p12 = por %p5982_p0, %p5981_p5 }
 0x10e   : > { %p5979_p6 = pneg %p5978_p1 }
 0x10f   : > { %p5985_p2 = por %p5984_p9, %p5983_p12 }
 0x111   : > { %p5986_p7 = pnand %p5985_p2, %p5979_p6 }
 0x113   : > { %5989 = shalt.err (!%p5986_p7)
}
 0x114   : > { %s5990_s17 = scalar_lea.vmem %s6673_s13, 256  ;;  %s6216_s1 = smov [#allocation7]  }
 0x115   : > { %p5991_p11 = scmp.ne.s32.totalorder %s6673_s13, %s5990_s17  ;;  %s5995_s10 = sshll.u32 %s6216_s1, 4  ;;  %s5996_s10 = int_to_ptr.vmem [resolvable:$false] %s5995_s10 }
 0x116   : > { %s5997_s25 = scalar_lea.vmem %s5996_s10, 512  ;;  %p5998_p13 = scmp.lt.s32.totalorder %s6673_s13, %s5996_s10 }
 0x117   : > { %p5993_p3 = pnand %p5991_p11, %p7561_p10  ;;  %p5999_p1 = scmp.lt.s32.totalorder %s5997_s25, %s5990_s17 }
 0x119   : > { %p5994_p4 = pneg %p5993_p3  ;;  %p6000_p5 = por %p5999_p1, %p5998_p13 }
 0x11b   : > { %p6001_p0 = pnand %p6000_p5, %p5994_p4 }
 0x11d   : > { %6004 = shalt.err (!%p6001_p0)
}
 0x11e   : > { %p7562_p6 = scmp.ne.s32.totalorder %s7531_s11, 0  ;;  %s7563_s16 = sld [smem:[#allocation36_spill]] }
 0x11f   : > { %s7564_s9 = sld [smem:[#allocation46_spill]]  ;;  %s482_s7 = scalar_lea.vmem [#allocation10], %s7554_s26 }
 0x120   : > { %s489_s5 = sshll.u32 %s482_s7, 4  ;;  %s6707_s5 = int_to_ptr.vmem [resolvable:$true] %s489_s5 }
 0x124   : > { %5580 = dma.hbm_to_vmem [thread:$0]  (!%p7562_p6), %s6636_s2, 256, %s6673_s13, %s7563_s16, %s7535_s30, %s7535_s30, %s7534_s20  }
 0x125   : > { %s6704_s28 = scalar_lea.hbm %s7564_s9, %s6430_s19  ;;  %s6010_s13 = scalar_lea.hbm %s7564_s9, 512 }
 0x126   : > { %s6005_s6 = scalar_lea.hbm %s6704_s28, 256  ;;  %p6011_p7 = scmp.lt.u32.totalorder %s6704_s28, %s7564_s9 }
 0x127   : > { %p6006_p12 = scmp.ne.s32.totalorder %s6704_s28, %s6005_s6  ;;  %p6012_p11 = scmp.lt.u32.totalorder %s6010_s13, %s6005_s6 }
 0x128   : > { %p6014_p4 = scmp.lt.u32.totalorder %s6005_s6, %s6704_s28 }
 0x129   : > { %p6008_p9 = pnand %p6006_p12, %p7561_p10  ;;  %p6013_p3 = por %p6012_p11, %p6011_p7 }
 0x12b   : > { %p6009_p2 = pneg %p6008_p9  ;;  %p6015_p13 = por %p6014_p4, %p6013_p3 }
 0x12d   : > { %p6016_p1 = pnand %p6015_p13, %p6009_p2 }
 0x12f   : > { %6019 = shalt.err (!%p6016_p1)
}
 0x130   : > { %s6020_s26 = scalar_lea.vmem %s6707_s5, 256  ;;  %s6217_s1 = smov [#allocation10]  }
 0x131   : > { %p6021_p5 = scmp.ne.s32.totalorder %s6707_s5, %s6020_s26  ;;  %s6025_s10 = sshll.u32 %s6217_s1, 4  ;;  %s6026_s10 = int_to_ptr.vmem [resolvable:$false] %s6025_s10 }
 0x132   : > { %s6027_s25 = scalar_lea.vmem %s6026_s10, 512  ;;  %p6028_p9 = scmp.lt.s32.totalorder %s6707_s5, %s6026_s10 }
 0x133   : > { %p6023_p0 = pnand %p6021_p5, %p7561_p10  ;;  %p6029_p8 = scmp.lt.s32.totalorder %s6027_s25, %s6020_s26 }
 0x135   : > { %p6024_p12 = pneg %p6023_p0  ;;  %p6030_p7 = por %p6029_p8, %p6028_p9 }
 0x137   : > { %p6031_p11 = pnand %p6030_p7, %p6024_p12 }
 0x139   : > { %6034 = shalt.err (!%p6031_p11)
}
 0x13a   : > { %5586 = dma.hbm_to_vmem [thread:$0]  (!%p7562_p6), %s6704_s28, 256, %s6707_s5, %s6497_s0, %s7535_s30, %s7535_s30, %s7534_s20  }
 0x13b   : > { %s7565_s12 = sld [smem:[#allocation34_spill]] }
 0x141   : > { %p7566_p10 = scmp.ne.s32.totalorder %s7565_s12, 0 }
 0x142   : > { %s7567_s16 = sld [smem:[#allocation29_spill]] (!%p7566_p10)  ;;  %s7568_s24 = sld [smem:[#allocation40_spill]] (!%p7566_p10) }
 0x143   : > { %501 = sbr.rel (%p7566_p10) target bundleno = 3066 (0xbfa), region = 56 }
 0x148   : > { %s6737_s14 = sand.u32 (!%p7566_p10), 1, %s7567_s16   ;;  %p7569_p8 = scmp.ne.s32.totalorder (!%p7566_p10), %s7568_s24, 0 }
 0x149   : > { %s6740_s7 = sshll.u32 (!%p7566_p10), %s6737_s14, 4  ;;  %s504_s11 = scalar_lea.sflag (!%p7566_p10), [#allocation3], %s6737_s14 }
 0x14a   : > { %s507_s6 = scalar_lea.vmem [#allocation2], %s6740_s7 }
 0x14b   : > { %6136 = dma.done.wait (%p7569_p8), %s504_s11, 256  }
 0x14c   : > { %6138 = vsyncadd (%p7569_p8), %s504_s11, 4294967040  ;;  %s7570_s0 = sld [smem:[#allocation32_spill]]  ;;  %s7571_s20 = sld [smem:[#allocation27_spill]] }
 0x14d   : > { %s7572_s30 = sld [smem:[#allocation33_spill]] }
 0x152   : > { %s512_s28 = sand.u32 1, %s7570_s0   ;;  %s514_s5 = sand.u32 1, %s7571_s20  }
 0x153   : > { %s6750_s8 = sshll.u32 %s514_s5, 4  ;;  %s513_s2 = scalar_lea.sflag [#allocation6], %s512_s28 }
 0x154   : > { %s516_s13 = scalar_lea.vmem [#allocation5], %s6750_s8  ;;  %p7573_p6 = scmp.ne.s32.totalorder %s7572_s30, 0 }
 0x156   : > { %6140 = dma.done.wait (%p7573_p6), %s513_s2, 512  }
 0x157   : > { %6142 = vsyncadd (%p7573_p6), %s513_s2, 4294966784  ;;  %s525_s17 = scalar_lea.vmem [#allocation7], %s6750_s8  ;;  %s531_s19 = scalar_lea.sflag [#allocation9], %s512_s28 }
 0x158   : > { %s534_s26 = scalar_lea.vmem [#allocation8], %s6750_s8 }
 0x159   : > { %6144 = dma.done.wait (%p7573_p6), %s531_s19, 512  }
 0x15a   : > { %6146 = vsyncadd (%p7573_p6), %s531_s19, 4294966784  ;;  %s543_s1 = scalar_lea.vmem [#allocation10], %s6750_s8  ;;  %p7574_p2 = scmp.eq.s32.totalorder %s7570_s0, 0 }
 0x15c   : > { %6148 = dma.done.wait (%p7574_p2), [#allocation12], 1024   ;;  %p7575_p3 = pmov %p7574_p2 }
 0x15d   : > { %p7576_p4 = pmov %p7574_p2 }
 0x15e   : > { %6150 = vsyncadd (%p7575_p3), [#allocation12], 4294966272 }
 0x15f   : > { %6152 = dma.done.wait (%p7576_p4), [#allocation15], 1024   ;;  %p7577_p13 = pmov %p7574_p2 }
 0x160   : > { %vm638_vm0 = vcmask 261120   ;;  %v630_v0 = vld [vmem:[#allocation11] sm:$0xff]  ;;  %v631_v1 = vld [vmem:[#allocation11 + $0x8] sm:$0xff]  ;;  %v632_v2 = vld [vmem:[#allocation11 + $0x10] sm:$0xff]  ;;  %s6218_s10 = smov 112   ;;  %s6219_s25 = smov 120   ;;  %v745_v14 = vlaneseq }
 0x161   : > { %6154 = vsyncadd (%p7577_p13), [#allocation15], 4294966272  ;;  %v5408_v3 = vpack.c.bf16 %v631_v1, %v630_v0  ;;  %v633_v4 = vld [vmem:[#allocation11 + $0x18] sm:$0xff]  ;;  %v624_v5 = vld [vmem:[%s507_s6] sm:$0xff]  ;;  %s6220_s12 = smov 104   ;;  %vm1596_vm1 = vcmask 64512  }
 0x162   : > { %v5412_v6 = vpack.c.bf16 %v633_v4, %v632_v2  ;;  %5260 = vmatprep.mubr.msk.f32.mxu0 %vm638_vm0, %v624_v5  ;;  %v626_v7 = vld [vmem:[%s516_s13] sm:$0xff]  ;;  %v627_v8 = vld [vmem:[%s516_s13 + $0x8] sm:$0xff]  ;;  %v6221_v12 = vmov 1983009808   ;;  %v746_v18 = vshrl.u32 %v745_v14, 7  ;;  %vm6822_vm2 = vmpackc.low %vm1596_vm1, %vm1596_vm1  ;;  %vm1945_vm3 = vcmask 130048  }
 0x163   : > { %5409 = vmatprep.subr.bf16.mxu0 %v5408_v3  ;;  %1020 = vrot.lane.b32.xlu1 %v626_v7, %s6218_s10  ;;  %v625_v9 = vld [vmem:[%s507_s6 + $0x8] sm:$0xff]  ;;  %v743_v13 = vunpack.c.l.s4 %v6221_v12  ;;  %v6222_v22 = vmov 1934713408   ;;  %s6223_s16 = smov 16   ;;  %s6224_s24 = smov 8   ;;  %vm2658_vm4 = vcmask 195584  }
 0x164   : > { %5411 = vmatpush3.bf16.msra.mxu0 %v5408_v3  ;;  %1014 = vrot.lane.b32.xlu0 %v626_v7, %s6219_s25  ;;  %v775_v23 = vunpack.c.l.s4 %v6222_v22  ;;  %s6225_s11 = smov 24   ;;  %s7069_s6 = scalar_lea.vmem [#allocation17], %s6740_s7  ;;  %vm3925_vm5 = vcmask 97280   ;;  %vm4004_vm6 = vcmask 1043456   ;;  %vm6227_vm7 = vmmov 1  }
 0x165   : > { %5413 = vmatprep.subr.bf16.mxu0 %v5412_v6  ;;  %v744_v17 = vunpack.c.0.s8 %v743_v13  ;;  %vm7256_vm8 = vmpackc.low %vm4004_vm6, %vm6227_vm7  ;;  %s7582_s0 = sld [smem:[#allocation30_spill]]  ;;  %s7583_s20 = sld [smem:[#allocation31_spill]] }
 0x166   : > { %v776_v32 = vunpack.c.0.s8 %v775_v23  ;;  %s7584_s30 = sld [smem:[#allocation38_spill]]  ;;  %s4757_s28 = sshll.u32 %s7069_s6, 4  ;;  %s7337_s28 = int_to_ptr.vmem [resolvable:$true] %s4757_s28 }
 0x167   : > { %1022 = vrot.lane.b32.xlu1 %v627_v8, %s6218_s10  ;;  %v6784_v21 = vsub.s32 %v744_v17, %v746_v18 }
 0x168   : > { %5415 = vmatpush3.bf16.msra.mxu0 %v5412_v6  ;;  %1016 = vrot.lane.b32.xlu0 %v627_v8, %s6219_s25  ;;  %v6794_v41 = vsub.s32 %v776_v32, %v746_v18 }
 0x16b   : > { %5261 = vmatmul.mubr.msk.f32.vlgmr.msra.gmra.mrb[0].mxu0 %vm638_vm0, %v625_v9  ;;  %1028 = vrot.lane.b32.xlu1 %v627_v8, %s6220_s12  ;;  %s5152_s5 = sshll.u32 %s7582_s0, 1  ;;  %s5153_s8 = sshll.u32 %s7583_s20, 2 }
 0x16c   : > { %1026 = vrot.lane.b32.xlu0 %v626_v7, %s6220_s12  ;;  %s7335_s2 = sadd.s32 %s5153_s8, %s5152_s5  ;;  %p7586_p5 = scmp.ne.s32.totalorder %s7584_s30, 0 }
 0x16d   : > { %s5154_s13 = sshll.u32 %s7335_s2, 7 }
 0x1d5   : > { %v1021_v11 = vpop.permute.xlu1 %1020 }
 0x1d6   : > { %v1015_v10 = vpop.permute.xlu0 %1014  ;;  %v1032_v24 = vcombine.low %v626_v7, %v1021_v11  ;;  %v1033_v25 = vcombine.high %v626_v7, %v1021_v11 }
 0x1d8   : > { %v1040_v33 = vrot.slane %v1032_v24, %v6784_v21  ;;  %v1047_v34 = vrot.slane %v1033_v25, %v6784_v21 }
 0x1d9   : > { %v1023_v16 = vpop.permute.xlu1 %1022 }
 0x1da   : > { %v1017_v15 = vpop.permute.xlu0 %1016  ;;  %v1100_v28 = vcombine.low %v627_v8, %v1023_v16  ;;  %v1101_v29 = vcombine.high %v627_v8, %v1023_v16 }
 0x1dc   : > { %v1108_v37 = vrot.slane %v1100_v28, %v6784_v21  ;;  %v1115_v38 = vrot.slane %v1101_v29, %v6784_v21 }
 0x1dd   : > { %v1029_v20 = vpop.permute.xlu1 %1028 }
 0x1de   : > { %v1027_v19 = vpop.permute.xlu0 %1026  ;;  %v1116_v30 = vcombine.low %v1017_v15, %v1029_v20  ;;  %v1117_v31 = vcombine.high %v1017_v15, %v1029_v20 }
 0x1df   : > { %v1048_v26 = vcombine.low %v1015_v10, %v1027_v19  ;;  %v1049_v27 = vcombine.high %v1015_v10, %v1027_v19 }
 0x1e0   : > { %v1124_v39 = vrot.slane %v1116_v30, %v6784_v21  ;;  %v1131_v40 = vrot.slane %v1117_v31, %v6784_v21 }
 0x1e1   : > { %v1056_v35 = vrot.slane %v1048_v26, %v6784_v21  ;;  %v1063_v36 = vrot.slane %v1049_v27, %v6784_v21 }
 0x1e2   : > { %v1132_v46 = vcombine.low %v1108_v37, %v1124_v39  ;;  %v1133_v47 = vcombine.high %v1108_v37, %v1124_v39  ;;  %v1148_v48 = vcombine.low %v1115_v38, %v1131_v40  ;;  %v1149_v49 = vcombine.high %v1115_v38, %v1131_v40 }
 0x1e3   : > { %v1064_v42 = vcombine.low %v1040_v33, %v1056_v35  ;;  %v1065_v43 = vcombine.high %v1040_v33, %v1056_v35  ;;  %v1080_v44 = vcombine.low %v1047_v34, %v1063_v36  ;;  %v1081_v45 = vcombine.high %v1047_v34, %v1063_v36 }
 0x1e4   : > { %v1140_v54 = vrot.slane %v1132_v46, %v6794_v41  ;;  %v1147_v55 = vrot.slane %v1133_v47, %v6794_v41  ;;  %v1156_v56 = vrot.slane %v1148_v48, %v6794_v41  ;;  %v1163_v57 = vrot.slane %v1149_v49, %v6794_v41 }
 0x1e5   : > { %v1072_v50 = vrot.slane %v1064_v42, %v6794_v41  ;;  %v1079_v51 = vrot.slane %v1065_v43, %v6794_v41  ;;  %v1088_v52 = vrot.slane %v1080_v44, %v6794_v41  ;;  %v1095_v53 = vrot.slane %v1081_v45, %v6794_v41  ;;  %v6852_v43 = vld [vmem:[%s525_s17] sm:$0xff]  ;;  %v6856_v44 = vld [vmem:[%s525_s17 + $0x8] sm:$0xff] }
 0x1e6   : > { %v1236_v62 = vcombine.low %v1140_v54, %v1147_v55  ;;  %v5068_v63 = vcombine.high %v1140_v54, %v1147_v55  ;;  %v1252_v0 = vcombine.low %v1156_v56, %v1163_v57  ;;  %v5069_v1 = vcombine.high %v1156_v56, %v1163_v57 }
 0x1e7   : > { %v1168_v58 = vcombine.low %v1072_v50, %v1079_v51  ;;  %v5066_v59 = vcombine.high %v1072_v50, %v1079_v51  ;;  %v1184_v60 = vcombine.low %v1088_v52, %v1095_v53  ;;  %v5067_v61 = vcombine.high %v1088_v52, %v1095_v53 }
 0x1e8   : > { %v1243_v6 = vrot.slane %v1236_v62, %v6784_v21  ;;  %v1251_v7 = vrot.slane %v5068_v63, %v6784_v21  ;;  %v1259_v8 = vrot.slane %v1252_v0, %v6784_v21  ;;  %v1267_v9 = vrot.slane %v5069_v1, %v6784_v21 }
 0x1e9   : > { %v1175_v2 = vrot.slane %v1168_v58, %v6784_v21  ;;  %v1183_v3 = vrot.slane %v5066_v59, %v6784_v21  ;;  %v1191_v4 = vrot.slane %v1184_v60, %v6784_v21  ;;  %v1199_v5 = vrot.slane %v5067_v61, %v6784_v21 }
 0x1ea   : > { %v1268_v12 = vcombine.low %v1243_v6, %v1251_v7  ;;  %v1284_v13 = vcombine.low %v1259_v8, %v1267_v9  ;;  %v1269_v18 = vcombine.high %v1243_v6, %v1251_v7  ;;  %v1285_v20 = vcombine.high %v1259_v8, %v1267_v9 }
 0x1eb   : > { %v1200_v10 = vcombine.low %v1175_v2, %v1183_v3  ;;  %v1216_v11 = vcombine.low %v1191_v4, %v1199_v5  ;;  %v1201_v14 = vcombine.high %v1175_v2, %v1183_v3  ;;  %v1217_v16 = vcombine.high %v1191_v4, %v1199_v5 }
 0x1ec   : > { %v1276_v19 = vrot.slane %v1268_v12, %v6794_v41  ;;  %v1292_v22 = vrot.slane %v1284_v13, %v6794_v41  ;;  %v1283_v29 = vrot.slane %v1269_v18, %v6794_v41  ;;  %v1299_v30 = vrot.slane %v1285_v20, %v6794_v41 }
 0x1ed   : > { %v1208_v15 = vrot.slane %v1200_v10, %v6794_v41  ;;  %v1224_v17 = vrot.slane %v1216_v11, %v6794_v41  ;;  %v1215_v27 = vrot.slane %v1201_v14, %v6794_v41  ;;  %v1231_v28 = vrot.slane %v1217_v16, %v6794_v41 }
 0x1ee   : > { %v1300_v25 = vcombine.low %v1276_v19, %v1292_v22  ;;  %v1301_v26 = vcombine.high %v1276_v19, %v1292_v22  ;;  %v1302_v36 = vcombine.low %v1283_v29, %v1299_v30  ;;  %v1303_v37 = vcombine.high %v1283_v29, %v1299_v30 }
 0x1ef   : > { %v1232_v23 = vcombine.low %v1208_v15, %v1224_v17  ;;  %v1233_v24 = vcombine.high %v1208_v15, %v1224_v17  ;;  %v1234_v34 = vcombine.low %v1215_v27, %v1231_v28  ;;  %v1235_v35 = vcombine.high %v1215_v27, %v1231_v28 }
 0x1f1   : > { %v5416_v31 = vpack.c.bf16 %v1300_v25, %v1232_v23  ;;  %v5422_v33 = vpack.c.bf16 %v1301_v26, %v1233_v24  ;;  %v6834_v38 = vpack.c.bf16 %v1302_v36, %v1234_v34  ;;  %v6836_v39 = vpack.c.bf16 %v1303_v37, %v1235_v35 }
 0x1f3   : > { %5418 = vmatprep.subr.msk.bf16.mxu1 %vm6822_vm2, %v5416_v31  ;;  %5424 = vmatprep.subr.msk.bf16.mxu0 %vm6822_vm2, %v5422_v33 }
 0x1f4   : > { %5421 = vmatpush3.bf16.xpose.msk.msra.mxu1 %vm6822_vm2, %v5416_v31  ;;  %5427 = vmatpush3.bf16.xpose.msk.msra.mxu0 %vm6822_vm2, %v5422_v33 }
 0x1f5   : > { %5430 = vmatprep.subr.msk.bf16.mxu1 %vm6822_vm2, %v6834_v38  ;;  %5436 = vmatprep.subr.msk.bf16.mxu0 %vm6822_vm2, %v6836_v39 }
 0x23e   : > { %v5262_v40 = vpop.f32.mrb[0].mxu0 }
 0x23f   : > { %724 = vrot.lane.b32.xlu1 %v5262_v40, %s6219_s25  ;;  %v711_v42 = vpop.f32.mrb[1].mxu0 }
 0x240   : > { %722 = vrot.lane.b32.xlu0 %v711_v42, %s6219_s25 }
 0x243   : > { %728 = vrot.lane.b32.xlu1 %v711_v42, %s6218_s10 }
 0x244   : > { %734 = vrot.lane.b32.xlu0 %v711_v42, %s6220_s12 }
 0x247   : > { %736 = vrot.lane.b32.xlu1 %v5262_v40, %s6220_s12 }
 0x248   : > { %730 = vrot.lane.b32.xlu0 %v5262_v40, %s6218_s10 }
 0x24b   : > { %1306 = vrot.lane.b32.xlu1 %v6852_v43, %s6219_s25 }
 0x24c   : > { %1308 = vrot.lane.b32.xlu0 %v6856_v44, %s6219_s25 }
 0x24f   : > { %1312 = vrot.lane.b32.xlu1 %v6852_v43, %s6218_s10 }
 0x250   : > { %1318 = vrot.lane.b32.xlu0 %v6852_v43, %s6220_s12 }
 0x253   : > { %1314 = vrot.lane.b32.xlu1 %v6856_v44, %s6218_s10 }
 0x2b1   : > { %v725_v45 = vpop.permute.xlu1 %724 }
 0x2b2   : > { %v723_v46 = vpop.permute.xlu0 %722 }
 0x2b5   : > { %v729_v47 = vpop.permute.xlu1 %728 }
 0x2b6   : > { %v740_v48 = vcombine.low %v711_v42, %v729_v47  ;;  %v741_v49 = vcombine.high %v711_v42, %v729_v47  ;;  %v735_v50 = vpop.permute.xlu0 %734 }
 0x2b7   : > { %v756_v51 = vcombine.low %v723_v46, %v735_v50  ;;  %v757_v52 = vcombine.high %v723_v46, %v735_v50 }
 0x2b8   : > { %v748_v53 = vrot.slane %v740_v48, %v6784_v21  ;;  %v755_v54 = vrot.slane %v741_v49, %v6784_v21 }
 0x2b9   : > { %v764_v55 = vrot.slane %v756_v51, %v6784_v21  ;;  %v771_v56 = vrot.slane %v757_v52, %v6784_v21  ;;  %v737_v57 = vpop.permute.xlu1 %736 }
 0x2ba   : > { %v824_v58 = vcombine.low %v725_v45, %v737_v57  ;;  %v825_v59 = vcombine.high %v725_v45, %v737_v57  ;;  %v731_v60 = vpop.permute.xlu0 %730 }
 0x2bb   : > { %v772_v61 = vcombine.low %v748_v53, %v764_v55  ;;  %v773_v62 = vcombine.high %v748_v53, %v764_v55  ;;  %v788_v63 = vcombine.low %v755_v54, %v771_v56  ;;  %v789_v0 = vcombine.high %v755_v54, %v771_v56 }
 0x2bc   : > { %v832_v1 = vrot.slane %v824_v58, %v6784_v21  ;;  %v839_v2 = vrot.slane %v825_v59, %v6784_v21  ;;  %v808_v3 = vcombine.low %v5262_v40, %v731_v60  ;;  %v809_v4 = vcombine.high %v5262_v40, %v731_v60 }
 0x2bd   : > { %v780_v5 = vrot.slane %v772_v61, %v6794_v41  ;;  %v787_v6 = vrot.slane %v773_v62, %v6794_v41  ;;  %v796_v7 = vrot.slane %v788_v63, %v6794_v41  ;;  %v803_v8 = vrot.slane %v789_v0, %v6794_v41 }
 0x2be   : > { %v816_v9 = vrot.slane %v808_v3, %v6784_v21  ;;  %v823_v10 = vrot.slane %v809_v4, %v6784_v21 }
 0x2bf   : > { %v876_v11 = vcombine.low %v780_v5, %v787_v6  ;;  %v5062_v12 = vcombine.high %v780_v5, %v787_v6  ;;  %v892_v13 = vcombine.low %v796_v7, %v803_v8  ;;  %v5063_v14 = vcombine.high %v796_v7, %v803_v8 }
 0x2c0   : > { %v840_v15 = vcombine.low %v816_v9, %v832_v1  ;;  %v841_v16 = vcombine.high %v816_v9, %v832_v1  ;;  %v856_v17 = vcombine.low %v823_v10, %v839_v2  ;;  %v857_v18 = vcombine.high %v823_v10, %v839_v2 }
 0x2c1   : > { %v883_v19 = vrot.slane %v876_v11, %v6784_v21  ;;  %v891_v20 = vrot.slane %v5062_v12, %v6784_v21  ;;  %v899_v22 = vrot.slane %v892_v13, %v6784_v21  ;;  %v907_v23 = vrot.slane %v5063_v14, %v6784_v21 }
 0x2c2   : > { %v848_v24 = vrot.slane %v840_v15, %v6794_v41  ;;  %v855_v25 = vrot.slane %v841_v16, %v6794_v41  ;;  %v864_v26 = vrot.slane %v856_v17, %v6794_v41  ;;  %v871_v27 = vrot.slane %v857_v18, %v6794_v41  ;;  %v1307_v16 = vpop.permute.xlu1 %1306  ;;  %v1309_v17 = vpop.permute.xlu0 %1308 }
 0x2c3   : > { %v908_v28 = vcombine.low %v883_v19, %v891_v20  ;;  %v924_v29 = vcombine.low %v899_v22, %v907_v23  ;;  %v909_v35 = vcombine.high %v883_v19, %v891_v20  ;;  %v925_v37 = vcombine.high %v899_v22, %v907_v23 }
 0x2c4   : > { %v944_v30 = vcombine.low %v848_v24, %v855_v25  ;;  %v5064_v31 = vcombine.high %v848_v24, %v855_v25  ;;  %v960_v33 = vcombine.low %v864_v26, %v871_v27  ;;  %v5065_v34 = vcombine.high %v864_v26, %v871_v27 }
 0x2c5   : > { %v916_v36 = vrot.slane %v908_v28, %v6794_v41  ;;  %v932_v40 = vrot.slane %v924_v29, %v6794_v41  ;;  %v923_v54 = vrot.slane %v909_v35, %v6794_v41  ;;  %v939_v55 = vrot.slane %v925_v37, %v6794_v41 }
 0x2c6   : > { %v951_v42 = vrot.slane %v944_v30, %v6784_v21  ;;  %v959_v45 = vrot.slane %v5064_v31, %v6784_v21  ;;  %v967_v46 = vrot.slane %v960_v33, %v6784_v21  ;;  %v975_v47 = vrot.slane %v5065_v34, %v6784_v21  ;;  %v1313_v18 = vpop.permute.xlu1 %1312  ;;  %v1319_v19 = vpop.permute.xlu0 %1318 }
 0x2c7   : > { %v940_v48 = vcombine.low %v916_v36, %v932_v40  ;;  %v941_v49 = vcombine.high %v916_v36, %v932_v40  ;;  %v942_v60 = vcombine.low %v923_v54, %v939_v55  ;;  %v943_v61 = vcombine.high %v923_v54, %v939_v55 }
 0x2c8   : > { %v976_v50 = vcombine.low %v951_v42, %v959_v45  ;;  %v992_v51 = vcombine.low %v967_v46, %v975_v47  ;;  %v977_v56 = vcombine.high %v951_v42, %v959_v45  ;;  %v993_v57 = vcombine.high %v967_v46, %v975_v47 }
 0x2c9   : > { %5267 = vmatprep.mubr.msk.f32.mxu1 %vm1596_vm1, %v940_v48  ;;  %5274 = vmatprep.mubr.msk.f32.mxu0 %vm1596_vm1, %v941_v49  ;;  %v1324_v20 = vcombine.low %v6852_v43, %v1313_v18  ;;  %v1325_v22 = vcombine.high %v6852_v43, %v1313_v18  ;;  %v1340_v23 = vcombine.low %v1307_v16, %v1319_v19 }
 0x2ca   : > { %v984_v52 = vrot.slane %v976_v50, %v6794_v41  ;;  %v1000_v53 = vrot.slane %v992_v51, %v6794_v41  ;;  %v991_v62 = vrot.slane %v977_v56, %v6794_v41  ;;  %v1007_v63 = vrot.slane %v993_v57, %v6794_v41  ;;  %v1315_v34 = vpop.permute.xlu1 %1314 }
 0x2cb   : > { %v1341_v24 = vcombine.high %v1307_v16, %v1319_v19  ;;  %v1332_v25 = vrot.slane %v1324_v20, %v6784_v21  ;;  %v1339_v26 = vrot.slane %v1325_v22, %v6784_v21  ;;  %v1348_v27 = vrot.slane %v1340_v23, %v6784_v21 }
 0x2cc   : > { %v1008_v58 = vcombine.low %v984_v52, %v1000_v53  ;;  %v1009_v59 = vcombine.high %v984_v52, %v1000_v53  ;;  %v1010_v0 = vcombine.low %v991_v62, %v1007_v63  ;;  %v1011_v1 = vcombine.high %v991_v62, %v1007_v63 }
 0x2cd   : > { %v1355_v28 = vrot.slane %v1341_v24, %v6784_v21  ;;  %v1356_v29 = vcombine.low %v1332_v25, %v1348_v27  ;;  %v1357_v30 = vcombine.high %v1332_v25, %v1348_v27  ;;  %v1392_v47 = vcombine.low %v6856_v44, %v1315_v34 }
 0x2ce   : > { %5268 = vmatmul.mubr.msk.f32.vlgmr.msra.gmra.mrb[0].mxu1 %vm1596_vm1, %v1008_v58  ;;  %5275 = vmatmul.mubr.msk.f32.vlgmr.msra.gmra.mrb[2].mxu0 %vm1596_vm1, %v1009_v59  ;;  %v1393_v48 = vcombine.high %v6856_v44, %v1315_v34 }
 0x2cf   : > { %5433 = vmatpush3.bf16.xpose.msk.msra.mxu1 %vm6822_vm2, %v6834_v38  ;;  %5439 = vmatpush3.bf16.xpose.msk.msra.mxu0 %vm6822_vm2, %v6836_v39  ;;  %v1372_v31 = vcombine.low %v1339_v26, %v1355_v28  ;;  %v1373_v33 = vcombine.high %v1339_v26, %v1355_v28  ;;  %v1364_v35 = vrot.slane %v1356_v29, %v6794_v41 }
 0x2d0   : > { %5281 = vmatprep.mubr.msk.f32.mxu1 %vm1596_vm1, %v942_v60  ;;  %5288 = vmatprep.mubr.msk.f32.mxu0 %vm1596_vm1, %v943_v61  ;;  %v1371_v36 = vrot.slane %v1357_v30, %v6794_v41  ;;  %v1400_v60 = vrot.slane %v1392_v47, %v6784_v21  ;;  %v1407_v61 = vrot.slane %v1393_v48, %v6784_v21 }
 0x2d1   : > { %v1380_v43 = vrot.slane %v1372_v31, %v6794_v41  ;;  %v1387_v37 = vrot.slane %v1373_v33, %v6794_v41 }
 0x2d2   : > { %v1460_v51 = vcombine.low %v1364_v35, %v1371_v36  ;;  %v5070_v52 = vcombine.high %v1364_v35, %v1371_v36 }
 0x2d3   : > { %v1476_v53 = vcombine.low %v1380_v43, %v1387_v37  ;;  %v5071_v54 = vcombine.high %v1380_v43, %v1387_v37 }
 0x2d6   : > { %5282 = vmatmul.mubr.msk.f32.vlgmr.msra.gmra.mrb[2].mxu1 %vm1596_vm1, %v1010_v0  ;;  %5289 = vmatmul.mubr.msk.f32.vlgmr.msra.gmra.mrb[4].mxu0 %vm1596_vm1, %v1011_v1  ;;  %v6960_v0 = vrot.slane %v1460_v51, %v6784_v21  ;;  %v1475_v1 = vrot.slane %v5070_v52, %v6784_v21 }
 0x2d8   : > { %v1492_v19 = vcombine.low %v6960_v0, %v1475_v1 }
 0x2da   : > { %v1500_v36 = vrot.slane %v1492_v19, %v6794_v41 }
 0x3a1   : > { %v5269_v38 = vpop.f32.mrb[0].mxu1  ;;  %v5276_v2 = vpop.f32.mrb[2].mxu0 }
 0x3a2   : > { %v6914_v3 = vpop.f32.mrb[1].mxu1  ;;  %v6916_v39 = vpop.f32.mrb[3].mxu0  ;;  %v1955_v4 = vsel %vm1945_vm3, %v5276_v2, -inf  ;;  %v1949_v5 = vsel %vm1945_vm3, %v5269_v38, -inf }
 0x3a3   : > { %1956 = vmax.xlane.f32.xlu0 %v1955_v4  ;;  %1950 = vmax.xlane.f32.xlu1 %v1949_v5  ;;  %v1946_v6 = vsel %vm1945_vm3, %v6914_v3, -inf  ;;  %v1952_v11 = vsel %vm1945_vm3, %v6916_v39, -inf }
 0x3a7   : > { %1947 = vmax.xlane.f32.xlu0 %v1946_v6 }
 0x3a9   : > { %v6922_v7 = vpop.f32.mrb[2].mxu1  ;;  %v6924_v8 = vpop.f32.mrb[4].mxu0 }
 0x3aa   : > { %v6926_v9 = vpop.f32.mrb[3].mxu1  ;;  %v6928_v10 = vpop.f32.mrb[5].mxu0  ;;  %v1967_v14 = vsel %vm1945_vm3, %v6924_v8, -inf  ;;  %v1961_v15 = vsel %vm1945_vm3, %v6922_v7, -inf }
 0x3ab   : > { %1953 = vmax.xlane.f32.xlu0 %v1952_v11  ;;  %v1958_v12 = vsel %vm1945_vm3, %v6926_v9, -inf  ;;  %v1964_v13 = vsel %vm1945_vm3, %v6928_v10, -inf }
 0x3af   : > { %1959 = vmax.xlane.f32.xlu0 %v1958_v12 }
 0x3b3   : > { %1965 = vmax.xlane.f32.xlu0 %v1964_v13 }
 0x3b4   : > { %1320 = vrot.lane.b32.xlu1 %v6856_v44, %s6220_s12 }
 0x3b7   : > { %1968 = vmax.xlane.f32.xlu0 %v1967_v14 }
 0x3d8   : > { %1962 = vmax.xlane.f32.xlu1 %v1961_v15 }
 0x430   : > { %v1951_v40 = vpop.xlane.xlu1 %1950  ;;  %v1957_v42 = vpop.xlane.xlu0 %1956 }
 0x431   : > { %v1971_v45 = vsub.f32 %v5269_v38, %v1951_v40  ;;  %v1973_v46 = vsub.f32 %v5276_v2, %v1957_v42  ;;  %v6964_v38 = vrot.slane %v1476_v53, %v6784_v21  ;;  %v6967_v2 = vrot.slane %v5071_v54, %v6784_v21 }
 0x433   : > { %v1980_v49 = vmul.f32 1.442695, %v1971_v45  ;;  %v1984_v50 = vmul.f32 1.442695, %v1973_v46  ;;  %v1508_v20 = vcombine.low %v6964_v38, %v6967_v2  ;;  %v1493_v45 = vcombine.high %v6960_v0, %v1475_v1 }
 0x434   : > { %v1321_v55 = vpop.permute.xlu1 %1320  ;;  %v1948_v56 = vpop.xlane.xlu0 %1947  ;;  %v1509_v51 = vcombine.high %v6964_v38, %v6967_v2 }
 0x435   : > { %5709 = vpow2.f32 %v1980_v49  ;;  %v1408_v57 = vcombine.low %v1309_v17, %v1321_v55  ;;  %v1409_v58 = vcombine.high %v1309_v17, %v1321_v55  ;;  %v1970_v59 = vsub.f32 %v6914_v3, %v1948_v56 }
 0x436   : > { %5711 = vpow2.f32 %v1984_v50  ;;  %v1516_v43 = vrot.slane %v1508_v20, %v6794_v41 }
 0x437   : > { %v1416_v44 = vrot.slane %v1408_v57, %v6784_v21  ;;  %v1423_v62 = vrot.slane %v1409_v58, %v6784_v21  ;;  %v1978_v63 = vmul.f32 1.442695, %v1970_v59 }
 0x438   : > { %v1954_v3 = vpop.xlane.xlu0 %1953  ;;  %v1524_v53 = vcombine.low %v1500_v36, %v1516_v43 }
 0x439   : > { %v1424_v4 = vcombine.low %v1400_v60, %v1416_v44  ;;  %v1425_v5 = vcombine.high %v1400_v60, %v1416_v44  ;;  %v1440_v6 = vcombine.low %v1407_v61, %v1423_v62  ;;  %v1441_v11 = vcombine.high %v1407_v61, %v1423_v62 }
 0x43a   : > { %5713 = vpow2.f32 %v1978_v63  ;;  %v1972_v12 = vsub.f32 %v6916_v39, %v1954_v3  ;;  %v1507_v60 = vrot.slane %v1493_v45, %v6794_v41  ;;  %v1525_v62 = vcombine.high %v1500_v36, %v1516_v43 }
 0x43b   : > { %v1432_v13 = vrot.slane %v1424_v4, %v6794_v41  ;;  %v1439_v14 = vrot.slane %v1425_v5, %v6794_v41  ;;  %v1448_v15 = vrot.slane %v1440_v6, %v6794_v41  ;;  %v1455_v16 = vrot.slane %v1441_v11, %v6794_v41 }
 0x43c   : > { %v1982_v17 = vmul.f32 1.442695, %v1972_v12  ;;  %v1960_v18 = vpop.xlane.xlu0 %1959  ;;  %v1523_v63 = vrot.slane %v1509_v51, %v6794_v41 }
 0x43d   : > { %v1528_v22 = vcombine.low %v1432_v13, %v1439_v14  ;;  %v5072_v23 = vcombine.high %v1432_v13, %v1439_v14  ;;  %v1544_v24 = vcombine.low %v1448_v15, %v1455_v16  ;;  %v5073_v25 = vcombine.high %v1448_v15, %v1455_v16 }
 0x43e   : > { %5715 = vpow2.f32 %v1982_v17  ;;  %v1974_v39 = vsub.f32 %v6926_v9, %v1960_v18  ;;  %v1527_v12 = vcombine.high %v1507_v60, %v1523_v63 }
 0x43f   : > { %v5710_v26 = vpop.eup %5709  ;;  %v1535_v27 = vrot.slane %v1528_v22, %v6784_v21  ;;  %v1543_v28 = vrot.slane %v5072_v23, %v6784_v21  ;;  %v1551_v29 = vrot.slane %v1544_v24, %v6784_v21  ;;  %v1559_v30 = vrot.slane %v5073_v25, %v6784_v21 }
 0x440   : > { %v5712_v31 = vpop.eup %5711  ;;  %v1986_v33 = vmul.f32 1.442695, %v1974_v39  ;;  %v1966_v34 = vpop.xlane.xlu0 %1965  ;;  %v1997_v35 = vsel %vm1945_vm3, %v5710_v26, 0.0 }
 0x441   : > { %v1976_v9 = vsub.f32 %v6928_v10, %v1966_v34  ;;  %1998 = vadd.xlane.f32.xlu1 %v1997_v35  ;;  %v2003_v37 = vsel %vm1945_vm3, %v5712_v31, 0.0  ;;  %v1560_v40 = vcombine.low %v1535_v27, %v1543_v28  ;;  %v1576_v42 = vcombine.low %v1551_v29, %v1559_v30 }
 0x442   : > { %5717 = vpow2.f32 %v1986_v33  ;;  %2004 = vadd.xlane.f32.xlu0 %v2003_v37  ;;  %v1561_v46 = vcombine.high %v1535_v27, %v1543_v28  ;;  %v1577_v47 = vcombine.high %v1551_v29, %v1559_v30 }
 0x443   : > { %v1990_v48 = vmul.f32 1.442695, %v1976_v9  ;;  %v1568_v49 = vrot.slane %v1560_v40, %v6794_v41  ;;  %v1584_v50 = vrot.slane %v1576_v42, %v6794_v41 }
 0x444   : > { %v5714_v10 = vpop.eup %5713  ;;  %v1969_v52 = vpop.xlane.xlu0 %1968  ;;  %v1575_v54 = vrot.slane %v1561_v46, %v6794_v41  ;;  %v1591_v55 = vrot.slane %v1577_v47, %v6794_v41 }
 0x445   : > { %5719 = vpow2.f32 %v1990_v48  ;;  %5295 = vmatprep.mubr.msk.f32.mxu1 %vm1945_vm3, %v5714_v10  ;;  %v1977_v56 = vsub.f32 %v6924_v8, %v1969_v52  ;;  %v1994_v57 = vsel %vm1945_vm3, %v5714_v10, 0.0  ;;  %v1592_v58 = vcombine.low %v1568_v49, %v1584_v50 }
 0x446   : > { %1995 = vadd.xlane.f32.xlu1 %v1994_v57  ;;  %v1593_v59 = vcombine.high %v1568_v49, %v1584_v50  ;;  %v1594_v2 = vcombine.low %v1575_v54, %v1591_v55  ;;  %v1526_v8 = vcombine.low %v1507_v60, %v1523_v63  ;;  %v1595_v6 = vcombine.high %v1575_v54, %v1591_v55 }
 0x447   : > { %v1992_v61 = vmul.f32 1.442695, %v1977_v56  ;;  %v5440_v44 = vpack.c.bf16 %v1592_v58, %v1524_v53 }
 0x448   : > { %v5716_v0 = vpop.eup %5715  ;;  %v5444_v38 = vpack.c.bf16 %v1593_v59, %v1525_v62  ;;  %v5448_v5 = vpack.c.bf16 %v1594_v2, %v1526_v8  ;;  %v5452_v14 = vpack.c.bf16 %v1595_v6, %v1527_v12 }
 0x449   : > { %5721 = vpow2.f32 %v1992_v61  ;;  %5441 = vmatprep.subr.bf16.mxu1 %v5440_v44  ;;  %v2000_v1 = vsel %vm1945_vm3, %v5716_v0, 0.0 }
 0x44a   : > { %2001 = vadd.xlane.f32.xlu0 %v2000_v1  ;;  %5443 = vmatpush3.bf16.msra.mxu1 %v5440_v44 }
 0x44b   : > { %5445 = vmatprep.subr.bf16.mxu1 %v5444_v38 }
 0x44c   : > { %v5718_v3 = vpop.eup %5717 }
 0x44d   : > { %5296 = vmatmul.mubr.msk.f32.vlgmr.msra.gmra.mrb[4].mxu1 %vm1945_vm3, %v5710_v26  ;;  %v2006_v4 = vsel %vm1945_vm3, %v5718_v3, 0.0 }
 0x44e   : > { %2007 = vadd.xlane.f32.xlu1 %v2006_v4  ;;  %5447 = vmatpush3.bf16.msra.mxu1 %v5444_v38 }
 0x44f   : > { %v5720_v11 = vpop.eup %5719  ;;  %5302 = vmatprep.mubr.msk.f32.mxu1 %vm1945_vm3, %v5716_v0  ;;  %5449 = vmatprep.subr.bf16.mxu1 %v5448_v5 }
 0x450   : > { %v2012_v13 = vsel %vm1945_vm3, %v5720_v11, 0.0 }
 0x451   : > { %5303 = vmatmul.mubr.msk.f32.vlgmr.msra.gmra.mrb[6].mxu1 %vm1945_vm3, %v5712_v31  ;;  %2013 = vadd.xlane.f32.xlu0 %v2012_v13 }
 0x452   : > { %5451 = vmatpush3.bf16.msra.mxu1 %v5448_v5  ;;  %5309 = vmatprep.mubr.msk.f32.mxu1 %vm1945_vm3, %v5718_v3 }
 0x453   : > { %v5722_v15 = vpop.eup %5721  ;;  %5453 = vmatprep.subr.bf16.mxu1 %v5452_v14 }
 0x454   : > { %v2015_v16 = vsel %vm1945_vm3, %v5722_v15, 0.0 }
 0x455   : > { %2016 = vadd.xlane.f32.xlu0 %v2015_v16 }
 0x465   : > { %v1963_v17 = vpop.xlane.xlu1 %1962 }
 0x466   : > { %v1975_v18 = vsub.f32 %v6922_v7, %v1963_v17 }
 0x468   : > { %v1988_v19 = vmul.f32 1.442695, %v1975_v18 }
 0x46a   : > { %5723 = vpow2.f32 %v1988_v19 }
 0x474   : > { %v5724_v20 = vpop.eup %5723 }
 0x475   : > { %5310 = vmatmul.mubr.msk.f32.vlgmr.msra.gmra.mrb[8].mxu1 %vm1945_vm3, %v5724_v20  ;;  %v2009_v22 = vsel %vm1945_vm3, %v5724_v20, 0.0 }
 0x476   : > { %5455 = vmatpush3.bf16.msra.mxu1 %v5452_v14  ;;  %2010 = vadd.xlane.f32.xlu1 %v2009_v22 }
 0x477   : > { %5316 = vmatprep.mubr.msk.f32.mxu1 %vm1945_vm3, %v5720_v11 }
 0x479   : > { %5317 = vmatmul.mubr.msk.f32.vlgmr.msra.gmra.mrb[10].mxu1 %vm1945_vm3, %v5722_v15 }
 0x4ce   : > { %v1999_v26 = vpop.xlane.xlu1 %1998 }
 0x4cf   : > { %v2005_v27 = vpop.xlane.xlu0 %2004  ;;  %5725 = vrcp.f32 %v1999_v26 }
 0x4d3   : > { %v1996_v7 = vpop.xlane.xlu1 %1995 }
 0x4d4   : > { %5727 = vrcp.f32 %v1996_v7 }
 0x4d7   : > { %v2002_v28 = vpop.xlane.xlu0 %2001 }
 0x4d9   : > { %v5726_v34 = vpop.eup %5725 }
 0x4db   : > { %v2008_v29 = vpop.xlane.xlu1 %2007 }
 0x4de   : > { %v2014_v30 = vpop.xlane.xlu0 %2013  ;;  %v5728_v35 = vpop.eup %5727 }
 0x4e2   : > { %v2017_v33 = vpop.xlane.xlu0 %2016 }
 0x503   : > { %v2011_v31 = vpop.xlane.xlu1 %2010 }
 0x504   : > { %5729 = vrcp.f32 %v2011_v31 }
 0x505   : > { %5731 = vrcp.f32 %v2008_v29 }
 0x506   : > { %5733 = vrcp.f32 %v2005_v27 }
 0x507   : > { %5735 = vrcp.f32 %v2002_v28 }
 0x508   : > { %5737 = vrcp.f32 %v2017_v33 }
 0x509   : > { %5739 = vrcp.f32 %v2014_v30 }
 0x50e   : > { %v5730_v36 = vpop.eup %5729 }
 0x50f   : > { %v5732_v9 = vpop.eup %5731 }
 0x510   : > { %v5734_v45 = vpop.eup %5733 }
 0x511   : > { %v5736_v48 = vpop.eup %5735 }
 0x512   : > { %v5738_v51 = vpop.eup %5737 }
 0x513   : > { %v5740_v54 = vpop.eup %5739 }
 0x520   : > { %v5297_v23 = vpop.f32.mrb[4].mxu1 }
 0x521   : > { %v2090_v24 = vpop.f32.mrb[5].mxu1  ;;  %v2351_v37 = vmul.f32 %v5726_v34, %v5297_v23 }
 0x522   : > { %v2350_v46 = vmul.f32 %v5728_v35, %v2090_v24 }
 0x524   : > { %v5304_v25 = vpop.f32.mrb[6].mxu1 }
 0x525   : > { %v2171_v39 = vpop.f32.mrb[7].mxu1  ;;  %v2353_v55 = vmul.f32 %v5734_v45, %v5304_v25 }
 0x526   : > { %v2352_v58 = vmul.f32 %v5736_v48, %v2171_v39 }
 0x548   : > { %v5311_v43 = vpop.f32.mrb[8].mxu1 }
 0x549   : > { %v2355_v40 = vmul.f32 %v5730_v36, %v5311_v43  ;;  %v2252_v42 = vpop.f32.mrb[9].mxu1 }
 0x54a   : > { %v2354_v47 = vmul.f32 %v5732_v9, %v2252_v42 }
 0x54b   : > { %v2426_v49 = vcombine.low %v2351_v37, %v2355_v40  ;;  %v2427_v50 = vcombine.high %v2351_v37, %v2355_v40 }
 0x54c   : > { %v2358_v10 = vcombine.low %v2350_v46, %v2354_v47  ;;  %v2359_v52 = vcombine.high %v2350_v46, %v2354_v47  ;;  %v5318_v53 = vpop.f32.mrb[10].mxu1 }
 0x54d   : > { %v2357_v56 = vmul.f32 %v5738_v51, %v5318_v53  ;;  %v2333_v57 = vpop.f32.mrb[11].mxu1  ;;  %v2434_v63 = vrot.slane %v2426_v49, %v6784_v21  ;;  %v2441_v0 = vrot.slane %v2427_v50, %v6784_v21 }
 0x54e   : > { %v2356_v59 = vmul.f32 %v5740_v54, %v2333_v57  ;;  %v2366_v2 = vrot.slane %v2358_v10, %v6784_v21  ;;  %v2373_v8 = vrot.slane %v2359_v52, %v6784_v21 }
 0x54f   : > { %v2442_v60 = vcombine.low %v2353_v55, %v2357_v56  ;;  %v2443_v61 = vcombine.high %v2353_v55, %v2357_v56 }
 0x550   : > { %v2374_v44 = vcombine.low %v2352_v58, %v2356_v59  ;;  %v2375_v62 = vcombine.high %v2352_v58, %v2356_v59  ;;  %v634_v59 = vld [vmem:[#allocation13] sm:$0xff] }
 0x551   : > { %v2450_v1 = vrot.slane %v2442_v60, %v6784_v21  ;;  %v2457_v38 = vrot.slane %v2443_v61, %v6784_v21  ;;  %v635_v60 = vld [vmem:[#allocation13 + $0x8] sm:$0xff] }
 0x552   : > { %v2382_v3 = vrot.slane %v2374_v44, %v6784_v21  ;;  %v2389_v4 = vrot.slane %v2375_v62, %v6784_v21 }
 0x553   : > { %v2458_v5 = vcombine.low %v2434_v63, %v2450_v1  ;;  %v2459_v6 = vcombine.high %v2434_v63, %v2450_v1  ;;  %v2474_v11 = vcombine.low %v2441_v0, %v2457_v38  ;;  %v2475_v12 = vcombine.high %v2441_v0, %v2457_v38  ;;  %v636_v0 = vld [vmem:[#allocation13 + $0x10] sm:$0xff]  ;;  %v637_v1 = vld [vmem:[#allocation13 + $0x18] sm:$0xff] }
 0x554   : > { %v2390_v13 = vcombine.low %v2366_v2, %v2382_v3  ;;  %v2391_v14 = vcombine.high %v2366_v2, %v2382_v3  ;;  %v2406_v15 = vcombine.low %v2373_v8, %v2389_v4  ;;  %v2407_v16 = vcombine.high %v2373_v8, %v2389_v4 }
 0x555   : > { %v2466_v17 = vrot.slane %v2458_v5, %v6794_v41  ;;  %v2473_v18 = vrot.slane %v2459_v6, %v6794_v41  ;;  %v2482_v19 = vrot.slane %v2474_v11, %v6794_v41  ;;  %v2489_v20 = vrot.slane %v2475_v12, %v6794_v41  ;;  %v2748_v5 = vld [vmem:[#allocation14] sm:$0xff]  ;;  %v2749_v6 = vld [vmem:[#allocation14 + $0x8] sm:$0xff]  ;;  %v2750_v11 = vld [vmem:[#allocation14 + $0x10] sm:$0xff] }
 0x556   : > { %v2398_v22 = vrot.slane %v2390_v13, %v6794_v41  ;;  %v2405_v23 = vrot.slane %v2391_v14, %v6794_v41  ;;  %v2414_v24 = vrot.slane %v2406_v15, %v6794_v41  ;;  %v2421_v25 = vrot.slane %v2407_v16, %v6794_v41  ;;  %v2751_v14 = vld [vmem:[#allocation14 + $0x18] sm:$0xff] }
 0x557   : > { %v2562_v39 = vcombine.low %v2466_v17, %v2473_v18  ;;  %v5100_v26 = vcombine.high %v2466_v17, %v2473_v18  ;;  %v2578_v27 = vcombine.low %v2482_v19, %v2489_v20  ;;  %v5101_v7 = vcombine.high %v2482_v19, %v2489_v20 }
 0x558   : > { %v2494_v28 = vcombine.low %v2398_v22, %v2405_v23  ;;  %v5098_v29 = vcombine.high %v2398_v22, %v2405_v23  ;;  %v2510_v30 = vcombine.low %v2414_v24, %v2421_v25  ;;  %v5099_v31 = vcombine.high %v2414_v24, %v2421_v25 }
 0x559   : > { %v2569_v33 = vrot.slane %v2562_v39, %v6784_v21  ;;  %v2577_v34 = vrot.slane %v5100_v26, %v6784_v21  ;;  %v2585_v35 = vrot.slane %v2578_v27, %v6784_v21  ;;  %v2593_v36 = vrot.slane %v5101_v7, %v6784_v21  ;;  %v2744_v7 = vld [vmem:[%s534_s26] sm:$0xff] }
 0x55a   : > { %v2501_v43 = vrot.slane %v2494_v28, %v6784_v21  ;;  %v2509_v9 = vrot.slane %v5098_v29, %v6784_v21  ;;  %v2517_v37 = vrot.slane %v2510_v30, %v6784_v21  ;;  %v2525_v40 = vrot.slane %v5099_v31, %v6784_v21  ;;  %v2745_v28 = vld [vmem:[%s534_s26 + $0x8] sm:$0xf]  ;;  %s7585_s26 = sld [smem:[#allocation51_spill]] }
 0x55b   : > { %v2595_v42 = vcombine.high %v2569_v33, %v2577_v34  ;;  %v2611_v45 = vcombine.high %v2585_v35, %v2593_v36  ;;  %v2594_v46 = vcombine.low %v2569_v33, %v2577_v34  ;;  %v2610_v47 = vcombine.low %v2585_v35, %v2593_v36 }
 0x55c   : > { %v2526_v48 = vcombine.low %v2501_v43, %v2509_v9  ;;  %v2542_v49 = vcombine.low %v2517_v37, %v2525_v40  ;;  %v2527_v50 = vcombine.high %v2501_v43, %v2509_v9  ;;  %v2543_v51 = vcombine.high %v2517_v37, %v2525_v40 }
 0x55d   : > { %v2609_v10 = vrot.slane %v2595_v42, %v6794_v41  ;;  %v2625_v52 = vrot.slane %v2611_v45, %v6794_v41  ;;  %v2602_v53 = vrot.slane %v2594_v46, %v6794_v41  ;;  %v2618_v54 = vrot.slane %v2610_v47, %v6794_v41 }
 0x55e   : > { %v2534_v55 = vrot.slane %v2526_v48, %v6794_v41  ;;  %v2550_v56 = vrot.slane %v2542_v49, %v6794_v41  ;;  %v2541_v57 = vrot.slane %v2527_v50, %v6794_v41  ;;  %v2557_v58 = vrot.slane %v2543_v51, %v6794_v41 }
 0x55f   : > { %v2628_v61 = vcombine.low %v2609_v10, %v2625_v52  ;;  %v2627_v44 = vcombine.high %v2602_v53, %v2618_v54  ;;  %v2629_v62 = vcombine.high %v2609_v10, %v2625_v52  ;;  %v2626_v63 = vcombine.low %v2602_v53, %v2618_v54 }
 0x560   : > { %v2559_v38 = vcombine.high %v2534_v55, %v2550_v56  ;;  %v2561_v2 = vcombine.high %v2541_v57, %v2557_v58  ;;  %v2560_v8 = vcombine.low %v2541_v57, %v2557_v58  ;;  %v2558_v3 = vcombine.low %v2534_v55, %v2550_v56 }
 0x561   : > { %2642 = vrot.lane.b32.xlu1 %v2628_v61, %s6223_s16  ;;  %2634 = vrot.lane.b32.xlu0 %v2627_v44, %s6224_s24  ;;  %v5456_v4 = vpack.c.bf16 %v635_v60, %v634_v59  ;;  %v5460_v12 = vpack.c.bf16 %v637_v1, %v636_v0  ;;  %v5464_v13 = vpack.c.bf16 %v2749_v6, %v2748_v5 }
 0x562   : > { %v5468_v15 = vpack.c.bf16 %v2751_v14, %v2750_v11 }
 0x563   : > { %5457 = vmatprep.subr.bf16.mxu0 %v5456_v4  ;;  %5465 = vmatprep.subr.bf16.mxu1 %v5464_v13 }
 0x564   : > { %5459 = vmatpush3.bf16.msra.mxu0 %v5456_v4  ;;  %5467 = vmatpush3.bf16.msra.mxu1 %v5464_v13 }
 0x565   : > { %2632 = vrot.lane.b32.xlu1 %v2559_v38, %s6224_s24  ;;  %2648 = vrot.lane.b32.xlu0 %v2561_v2, %s6225_s11 }
 0x566   : > { %5461 = vmatprep.subr.bf16.mxu0 %v5460_v12  ;;  %5469 = vmatprep.subr.bf16.mxu1 %v5468_v15 }
 0x568   : > { %5463 = vmatpush3.bf16.msra.mxu0 %v5460_v12  ;;  %5471 = vmatpush3.bf16.msra.mxu1 %v5468_v15 }
 0x569   : > { %2640 = vrot.lane.b32.xlu1 %v2560_v8, %s6223_s16  ;;  %3131 = vrot.lane.b32.xlu0 %v2744_v7, %s6219_s25 }
 0x56d   : > { %2650 = vrot.lane.b32.xlu1 %v2629_v62, %s6225_s11  ;;  %3137 = vrot.lane.b32.xlu0 %v2744_v7, %s6218_s10 }
 0x571   : > { %3133 = vrot.lane.b32.xlu1 %v2745_v28, %s6219_s25  ;;  %3143 = vrot.lane.b32.xlu0 %v2744_v7, %s6220_s12 }
 0x575   : > { %3139 = vrot.lane.b32.xlu1 %v2745_v28, %s6218_s10 }
 0x579   : > { %3145 = vrot.lane.b32.xlu1 %v2745_v28, %s6220_s12 }
 0x5d3   : > { %v2643_v16 = vpop.permute.xlu1 %2642  ;;  %v2635_v17 = vpop.permute.xlu0 %2634 }
 0x5d4   : > { %v2655_v22 = vsel %vm1596_vm1, %v2626_v63, %v2635_v17 }
 0x5d5   : > { %v2657_v26 = vsel %vm1945_vm3, %v2655_v22, %v2643_v16 }
 0x5d7   : > { %v2633_v18 = vpop.permute.xlu1 %2632  ;;  %v2649_v23 = vpop.permute.xlu0 %2648 }
 0x5d8   : > { %v2654_v19 = vsel %vm1596_vm1, %v2558_v3, %v2633_v18 }
 0x5db   : > { %v2641_v20 = vpop.permute.xlu1 %2640  ;;  %v3132_v31 = vpop.permute.xlu0 %3131 }
 0x5dc   : > { %v2656_v24 = vsel %vm1945_vm3, %v2654_v19, %v2641_v20 }
 0x5dd   : > { %v2659_v25 = vsel %vm2658_vm4, %v2656_v24, %v2649_v23 }
 0x5de   : > { %5327 = vmatprep.mubr.msk.f32.mxu0 %vm638_vm0, %v2659_v25 }
 0x5df   : > { %v2651_v39 = vpop.permute.xlu1 %2650  ;;  %v3138_v34 = vpop.permute.xlu0 %3137 }
 0x5e0   : > { %v2660_v27 = vsel %vm2658_vm4, %v2657_v26, %v2651_v39  ;;  %v3149_v9 = vcombine.low %v2744_v7, %v3138_v34  ;;  %v3150_v37 = vcombine.high %v2744_v7, %v3138_v34 }
 0x5e1   : > { %5328 = vmatmul.mubr.msk.f32.vlgmr.msra.gmra.mrb[6].mxu0 %vm638_vm0, %v2660_v27  ;;  %v6226_v27 = vmov 0.0  }
 0x5e2   : > { %v3157_v47 = vrot.slane %v3149_v9, %v6784_v21  ;;  %v3164_v48 = vrot.slane %v3150_v37, %v6784_v21  ;;  %v7129_v9 = vld [vmem:[%s543_s1] sm:$0xff]  ;;  %v7133_v37 = vld [vmem:[%s543_s1 + $0x8] sm:$0xf]  ;;  %s7345_s1 = scalar_lea.hbm %s7585_s26, %s5154_s13 }
 0x5e3   : > { %v3134_v33 = vpop.permute.xlu1 %3133  ;;  %v3144_v36 = vpop.permute.xlu0 %3143 }
 0x5e4   : > { %v3165_v40 = vcombine.low %v3132_v31, %v3144_v36  ;;  %v3166_v42 = vcombine.high %v3132_v31, %v3144_v36 }
 0x5e6   : > { %v3173_v49 = vrot.slane %v3165_v40, %v6784_v21  ;;  %v3180_v50 = vrot.slane %v3166_v42, %v6784_v21 }
 0x5e7   : > { %v3140_v35 = vpop.permute.xlu1 %3139 }
 0x5e8   : > { %v3217_v45 = vcombine.low %v2745_v28, %v3140_v35  ;;  %v3181_v52 = vcombine.low %v3157_v47, %v3173_v49  ;;  %v3182_v53 = vcombine.high %v3157_v47, %v3173_v49  ;;  %v3197_v54 = vcombine.low %v3164_v48, %v3180_v50 }
 0x5e9   : > { %v3198_v55 = vcombine.high %v3164_v48, %v3180_v50 }
 0x5ea   : > { %v3224_v51 = vrot.slane %v3217_v45, %v6784_v21  ;;  %v3189_v58 = vrot.slane %v3181_v52, %v6794_v41  ;;  %v3196_v59 = vrot.slane %v3182_v53, %v6794_v41  ;;  %v3205_v60 = vrot.slane %v3197_v54, %v6794_v41 }
 0x5eb   : > { %v3146_v43 = vpop.permute.xlu1 %3145  ;;  %v3212_v61 = vrot.slane %v3198_v55, %v6794_v41 }
 0x5ec   : > { %v3225_v46 = vcombine.low %v3134_v33, %v3146_v43  ;;  %v3251_v63 = vcombine.low %v3189_v58, %v3196_v59  ;;  %v5110_v0 = vcombine.high %v3189_v58, %v3196_v59 }
 0x5ed   : > { %v3267_v1 = vcombine.low %v3205_v60, %v3212_v61  ;;  %v5111_v38 = vcombine.high %v3205_v60, %v3212_v61 }
 0x5ee   : > { %v3232_v10 = vrot.slane %v3225_v46, %v6784_v21  ;;  %v3258_v3 = vrot.slane %v3251_v63, %v6784_v21  ;;  %v3266_v4 = vrot.slane %v5110_v0, %v6784_v21 }
 0x5ef   : > { %v3274_v5 = vrot.slane %v3267_v1, %v6784_v21  ;;  %v3282_v6 = vrot.slane %v5111_v38, %v6784_v21 }
 0x5f0   : > { %v3233_v56 = vcombine.low %v3224_v51, %v3232_v10  ;;  %v3234_v57 = vcombine.high %v3224_v51, %v3232_v10  ;;  %v3283_v13 = vcombine.low %v3258_v3, %v3266_v4  ;;  %v3284_v18 = vcombine.high %v3258_v3, %v3266_v4 }
 0x5f1   : > { %v3299_v14 = vcombine.low %v3274_v5, %v3282_v6  ;;  %v3300_v19 = vcombine.high %v3274_v5, %v3282_v6 }
 0x5f2   : > { %v3241_v44 = vrot.slane %v3233_v56, %v6794_v41  ;;  %v3248_v62 = vrot.slane %v3234_v57, %v6794_v41  ;;  %v3291_v15 = vrot.slane %v3283_v13, %v6794_v41  ;;  %v3298_v23 = vrot.slane %v3284_v18, %v6794_v41 }
 0x5f3   : > { %v3307_v16 = vrot.slane %v3299_v14, %v6794_v41  ;;  %v3314_v25 = vrot.slane %v3300_v19, %v6794_v41 }
 0x5f4   : > { %v3319_v2 = vcombine.low %v3241_v44, %v3248_v62  ;;  %v5112_v8 = vcombine.high %v3241_v44, %v3248_v62 }
 0x5f5   : > { %v3315_v20 = vcombine.low %v3291_v15, %v3307_v16  ;;  %v3316_v26 = vcombine.high %v3291_v15, %v3307_v16  ;;  %v3318_v31 = vcombine.high %v3298_v23, %v3314_v25 }
 0x5f6   : > { %v3326_v11 = vrot.slane %v3319_v2, %v6784_v21  ;;  %v3334_v12 = vrot.slane %v5112_v8, %v6784_v21 }
 0x5f8   : > { %v3335_v17 = vcombine.low %v3326_v11, %v3334_v12  ;;  %v3336_v24 = vcombine.high %v3326_v11, %v3334_v12 }
 0x5fa   : > { %v3343_v22 = vrot.slane %v3335_v17, %v6794_v41  ;;  %v3350_v28 = vrot.slane %v3336_v24, %v6794_v41 }
 0x5fc   : > { %v5472_v39 = vpack.c.bf16 %v3343_v22, %v3315_v20  ;;  %v3351_v7 = vcombine.high %v3343_v22, %v6226_v27  ;;  %v3352_v33 = vcombine.high %v3350_v28, %v6226_v27 }
 0x5fe   : > { %5474 = vmatprep.subr.msk.bf16.mxu0 %vm6822_vm2, %v5472_v39  ;;  %v7111_v35 = vpack.c.bf16 %v3352_v33, %v3318_v31 }
 0x5ff   : > { %5477 = vmatpush3.bf16.xpose.msk.msra.mxu0 %vm6822_vm2, %v5472_v39 }
 0x6b4   : > { %v5329_v29 = vpop.f32.mrb[6].mxu0 }
 0x6b5   : > { %2743 = vst.msk [vmem:[%s7069_s6 + $0x8] sm:$0xff] %vm638_vm0, %v5329_v29  ;;  %v2733_v30 = vpop.f32.mrb[7].mxu0 }
 0x6b6   : > { %2742 = vst.msk [vmem:[%s7069_s6] sm:$0xff] %vm638_vm0, %v2733_v30  ;;  %5338 = vmatprep.mubr.msk.f32.mxu1 %vm638_vm0, %v2733_v30  ;;  %v5478_v30 = vpack.c.bf16 %v3351_v7, %v3316_v26 }
 0x6b7   : > { %5339 = vmatmul.mubr.msk.f32.vlgmr.msra.gmra.mrb[12].mxu1 %vm638_vm0, %v5329_v29  ;;  %v3317_v29 = vcombine.low %v3298_v23, %v3314_v25 }
 0x6b8   : > { %5480 = vmatprep.subr.msk.bf16.mxu1 %vm6822_vm2, %v5478_v30 }
 0x6b9   : > { %v7107_v34 = vpack.c.bf16 %v3350_v28, %v3317_v29  ;;  %5483 = vmatpush3.bf16.xpose.msk.msra.mxu1 %vm6822_vm2, %v5478_v30 }
 0x6ba   : > { %5492 = vmatprep.subr.msk.bf16.mxu1 %vm6822_vm2, %v7111_v35 }
 0x6bb   : > { %5486 = vmatprep.subr.msk.bf16.mxu0 %vm6822_vm2, %v7107_v34 }
 0x78a   : > { %v5340_v36 = vpop.f32.mrb[12].mxu1 }
 0x78b   : > { %2841 = vrot.lane.b32.xlu1 %v5340_v36, %s6219_s25  ;;  %v2828_v43 = vpop.f32.mrb[13].mxu1 }
 0x78c   : > { %2839 = vrot.lane.b32.xlu0 %v2828_v43, %s6219_s25 }
 0x78f   : > { %2845 = vrot.lane.b32.xlu1 %v2828_v43, %s6218_s10 }
 0x790   : > { %2851 = vrot.lane.b32.xlu0 %v2828_v43, %s6220_s12 }
 0x793   : > { %2853 = vrot.lane.b32.xlu1 %v5340_v36, %s6220_s12 }
 0x794   : > { %2847 = vrot.lane.b32.xlu0 %v5340_v36, %s6218_s10 }
 0x797   : > { %3355 = vrot.lane.b32.xlu1 %v7129_v9, %s6219_s25 }
 0x798   : > { %3357 = vrot.lane.b32.xlu0 %v7133_v37, %s6219_s25  ;;  %s6035_s25 = scalar_lea.vmem %s7337_s28, 256 }
 0x799   : > { %p6036_p1 = scmp.ne.s32.totalorder %s7337_s28, %s6035_s25 }
 0x79b   : > { %3361 = vrot.lane.b32.xlu1 %v7129_v9, %s6218_s10  ;;  %p6037_p0 = pnand %p6036_p1, %p7586_p5 }
 0x79d   : > { %p6038_p12 = pneg %p6037_p0 }
 0x79f   : > { %3363 = vrot.lane.b32.xlu1 %v7133_v37, %s6218_s10  ;;  %s4737_s10 = scalar_lea.sflag [#allocation4], %s6737_s14 }
 0x7fd   : > { %v2842_v40 = vpop.permute.xlu1 %2841 }
 0x7fe   : > { %v2840_v42 = vpop.permute.xlu0 %2839 }
 0x801   : > { %v2846_v45 = vpop.permute.xlu1 %2845 }
 0x802   : > { %v2857_v46 = vcombine.low %v2828_v43, %v2846_v45  ;;  %v2858_v47 = vcombine.high %v2828_v43, %v2846_v45  ;;  %v2852_v48 = vpop.permute.xlu0 %2851 }
 0x803   : > { %v2873_v49 = vcombine.low %v2840_v42, %v2852_v48  ;;  %v2874_v50 = vcombine.high %v2840_v42, %v2852_v48 }
 0x804   : > { %v2865_v51 = vrot.slane %v2857_v46, %v6784_v21  ;;  %v2872_v10 = vrot.slane %v2858_v47, %v6784_v21 }
 0x805   : > { %v2881_v52 = vrot.slane %v2873_v49, %v6784_v21  ;;  %v2888_v53 = vrot.slane %v2874_v50, %v6784_v21  ;;  %v2854_v54 = vpop.permute.xlu1 %2853 }
 0x806   : > { %v2941_v55 = vcombine.low %v2842_v40, %v2854_v54  ;;  %v2942_v56 = vcombine.high %v2842_v40, %v2854_v54  ;;  %v2848_v57 = vpop.permute.xlu0 %2847 }
 0x807   : > { %v2889_v58 = vcombine.low %v2865_v51, %v2881_v52  ;;  %v2890_v59 = vcombine.high %v2865_v51, %v2881_v52  ;;  %v2905_v60 = vcombine.low %v2872_v10, %v2888_v53  ;;  %v2906_v61 = vcombine.high %v2872_v10, %v2888_v53 }
 0x808   : > { %v2949_v44 = vrot.slane %v2941_v55, %v6784_v21  ;;  %v2956_v62 = vrot.slane %v2942_v56, %v6784_v21  ;;  %v2925_v63 = vcombine.low %v5340_v36, %v2848_v57  ;;  %v2926_v0 = vcombine.high %v5340_v36, %v2848_v57 }
 0x809   : > { %v2897_v1 = vrot.slane %v2889_v58, %v6794_v41  ;;  %v2904_v38 = vrot.slane %v2890_v59, %v6794_v41  ;;  %v2913_v2 = vrot.slane %v2905_v60, %v6794_v41  ;;  %v2920_v8 = vrot.slane %v2906_v61, %v6794_v41 }
 0x80a   : > { %v2933_v3 = vrot.slane %v2925_v63, %v6784_v21  ;;  %v2940_v4 = vrot.slane %v2926_v0, %v6784_v21 }
 0x80b   : > { %v2993_v5 = vcombine.low %v2897_v1, %v2904_v38  ;;  %v5106_v6 = vcombine.high %v2897_v1, %v2904_v38  ;;  %v3009_v11 = vcombine.low %v2913_v2, %v2920_v8  ;;  %v5107_v12 = vcombine.high %v2913_v2, %v2920_v8 }
 0x80c   : > { %v2957_v13 = vcombine.low %v2933_v3, %v2949_v44  ;;  %v2958_v14 = vcombine.high %v2933_v3, %v2949_v44  ;;  %v2973_v15 = vcombine.low %v2940_v4, %v2956_v62  ;;  %v2974_v16 = vcombine.high %v2940_v4, %v2956_v62 }
 0x80d   : > { %v3000_v17 = vrot.slane %v2993_v5, %v6784_v21  ;;  %v3008_v18 = vrot.slane %v5106_v6, %v6784_v21  ;;  %v3016_v19 = vrot.slane %v3009_v11, %v6784_v21  ;;  %v3024_v20 = vrot.slane %v5107_v12, %v6784_v21 }
 0x80e   : > { %v2965_v22 = vrot.slane %v2957_v13, %v6794_v41  ;;  %v2972_v23 = vrot.slane %v2958_v14, %v6794_v41  ;;  %v2981_v24 = vrot.slane %v2973_v15, %v6794_v41  ;;  %v2988_v25 = vrot.slane %v2974_v16, %v6794_v41  ;;  %v7201_v14 = vpop.permute.xlu1 %3355  ;;  %v3358_v16 = vpop.permute.xlu0 %3357 }
 0x80f   : > { %v3025_v39 = vcombine.low %v3000_v17, %v3008_v18  ;;  %v3041_v26 = vcombine.low %v3016_v19, %v3024_v20  ;;  %v3026_v36 = vcombine.high %v3000_v17, %v3008_v18  ;;  %v3042_v43 = vcombine.high %v3016_v19, %v3024_v20 }
 0x810   : > { %v3061_v7 = vcombine.low %v2965_v22, %v2972_v23  ;;  %v5108_v28 = vcombine.high %v2965_v22, %v2972_v23  ;;  %v3077_v29 = vcombine.low %v2981_v24, %v2988_v25  ;;  %v5109_v30 = vcombine.high %v2981_v24, %v2988_v25 }
 0x811   : > { %v3033_v31 = vrot.slane %v3025_v39, %v6794_v41  ;;  %v3049_v33 = vrot.slane %v3041_v26, %v6794_v41  ;;  %v3040_v52 = vrot.slane %v3026_v36, %v6794_v41  ;;  %v3056_v53 = vrot.slane %v3042_v43, %v6794_v41 }
 0x812   : > { %v3068_v40 = vrot.slane %v3061_v7, %v6784_v21  ;;  %v3076_v42 = vrot.slane %v5108_v28, %v6784_v21  ;;  %v3084_v45 = vrot.slane %v3077_v29, %v6784_v21  ;;  %v3092_v46 = vrot.slane %v5109_v30, %v6784_v21  ;;  %v7203_v15 = vpop.permute.xlu1 %3361 }
 0x813   : > { %v3057_v47 = vcombine.low %v3033_v31, %v3049_v33  ;;  %v3058_v48 = vcombine.high %v3033_v31, %v3049_v33  ;;  %v3059_v58 = vcombine.low %v3040_v52, %v3056_v53  ;;  %v3060_v59 = vcombine.high %v3040_v52, %v3056_v53 }
 0x814   : > { %v3093_v49 = vcombine.low %v3068_v40, %v3076_v42  ;;  %v3109_v50 = vcombine.low %v3084_v45, %v3092_v46  ;;  %v3094_v54 = vcombine.high %v3068_v40, %v3076_v42  ;;  %v3110_v55 = vcombine.high %v3084_v45, %v3092_v46 }
 0x815   : > { %5345 = vmatprep.mubr.msk.f32.mxu0 %vm1596_vm1, %v3057_v47  ;;  %5352 = vmatprep.mubr.msk.f32.mxu1 %vm1596_vm1, %v3058_v48 }
 0x816   : > { %v3101_v51 = vrot.slane %v3093_v49, %v6794_v41  ;;  %v3117_v10 = vrot.slane %v3109_v50, %v6794_v41  ;;  %v3108_v60 = vrot.slane %v3094_v54, %v6794_v41  ;;  %v3124_v61 = vrot.slane %v3110_v55, %v6794_v41  ;;  %v3364_v17 = vpop.permute.xlu1 %3363 }
 0x817   : > { %v3441_v45 = vcombine.low %v7133_v37, %v3364_v17  ;;  %v3373_v54 = vcombine.low %v7129_v9, %v7203_v15 }
 0x818   : > { %v3125_v56 = vcombine.low %v3101_v51, %v3117_v10  ;;  %v3126_v57 = vcombine.high %v3101_v51, %v3117_v10  ;;  %v3127_v44 = vcombine.low %v3108_v60, %v3124_v61  ;;  %v3128_v62 = vcombine.high %v3108_v60, %v3124_v61 }
 0x81a   : > { %5346 = vmatmul.mubr.msk.f32.vlgmr.msra.gmra.mrb[8].mxu0 %vm1596_vm1, %v3125_v56  ;;  %5353 = vmatmul.mubr.msk.f32.vlgmr.msra.gmra.mrb[14].mxu1 %vm1596_vm1, %v3126_v57  ;;  %v3374_v57 = vcombine.high %v7129_v9, %v7203_v15 }
 0x81b   : > { %5489 = vmatpush3.bf16.xpose.msk.msra.mxu0 %vm6822_vm2, %v7107_v34  ;;  %5495 = vmatpush3.bf16.xpose.msk.msra.mxu1 %vm6822_vm2, %v7111_v35 }
 0x81c   : > { %5359 = vmatprep.mubr.msk.f32.mxu0 %vm1596_vm1, %v3059_v58  ;;  %5366 = vmatprep.mubr.msk.f32.mxu1 %vm1596_vm1, %v3060_v59 }
 0x822   : > { %5360 = vmatmul.mubr.msk.f32.vlgmr.msra.gmra.mrb[10].mxu0 %vm1596_vm1, %v3127_v44  ;;  %5367 = vmatmul.mubr.msk.f32.vlgmr.msra.gmra.mrb[16].mxu1 %vm1596_vm1, %v3128_v62 }
 0x8ed   : > { %v5347_v34 = vpop.f32.mrb[8].mxu0  ;;  %v5354_v63 = vpop.f32.mrb[14].mxu1 }
 0x8ee   : > { %v3655_v0 = vpop.f32.mrb[9].mxu0  ;;  %v3742_v32 = vpop.f32.mrb[15].mxu1  ;;  %v3929_v35 = vsel %vm3925_vm5, %v5347_v34, -inf  ;;  %v3935_v38 = vsel %vm3925_vm5, %v5354_v63, -inf }
 0x8ef   : > { %3930 = vmax.xlane.f32.xlu0 %v3929_v35  ;;  %v3932_v1 = vsel %vm3925_vm5, %v3742_v32, -inf  ;;  %v3926_v6 = vsel %vm3925_vm5, %v3655_v0, -inf }
 0x8f0   : > { %3933 = vmax.xlane.f32.xlu1 %v3932_v1 }
 0x8f3   : > { %3936 = vmax.xlane.f32.xlu0 %v3935_v38 }
 0x8f5   : > { %v5361_v2 = vpop.f32.mrb[10].mxu0  ;;  %v5368_v8 = vpop.f32.mrb[16].mxu1 }
 0x8f6   : > { %v3829_v3 = vpop.f32.mrb[11].mxu0  ;;  %v3916_v4 = vpop.f32.mrb[17].mxu1  ;;  %v3941_v5 = vsel %vm3925_vm5, %v5361_v2, -inf  ;;  %v3947_v12 = vsel %vm3925_vm5, %v5368_v8, -inf }
 0x8f7   : > { %3942 = vmax.xlane.f32.xlu1 %v3941_v5  ;;  %3927 = vmax.xlane.f32.xlu0 %v3926_v6  ;;  %v3938_v11 = vsel %vm3925_vm5, %v3829_v3, -inf  ;;  %v3944_v13 = vsel %vm3925_vm5, %v3916_v4, -inf }
 0x8fb   : > { %3939 = vmax.xlane.f32.xlu1 %v3938_v11  ;;  %3948 = vmax.xlane.f32.xlu0 %v3947_v12 }
 0x8ff   : > { %3945 = vmax.xlane.f32.xlu0 %v3944_v13 }
 0x90c   : > { %3369 = vrot.lane.b32.xlu1 %v7133_v37, %s6220_s12  ;;  %v3448_v37 = vrot.slane %v3441_v45, %v6784_v21 }
 0x915   : > { %3367 = vrot.lane.b32.xlu0 %v7129_v9, %s6220_s12  ;;  %v3381_v9 = vrot.slane %v3373_v54, %v6784_v21  ;;  %s6228_s12 = smov [#allocation17]  }
 0x97c   : > { %v3931_v18 = vpop.xlane.xlu0 %3930 }
 0x97d   : > { %v3951_v19 = vsub.f32 %v5347_v34, %v3931_v18  ;;  %v3934_v20 = vpop.xlane.xlu1 %3933 }
 0x97e   : > { %v3952_v22 = vsub.f32 %v3742_v32, %v3934_v20 }
 0x97f   : > { %v3960_v23 = vmul.f32 1.442695, %v3951_v19 }
 0x980   : > { %v3962_v24 = vmul.f32 1.442695, %v3952_v22  ;;  %v3937_v25 = vpop.xlane.xlu0 %3936 }
 0x981   : > { %5741 = vpow2.f32 %v3960_v23  ;;  %v3953_v39 = vsub.f32 %v5354_v63, %v3937_v25 }
 0x982   : > { %5743 = vpow2.f32 %v3962_v24 }
 0x983   : > { %v3964_v26 = vmul.f32 1.442695, %v3953_v39 }
 0x984   : > { %v3943_v7 = vpop.xlane.xlu1 %3942  ;;  %v3928_v28 = vpop.xlane.xlu0 %3927 }
 0x985   : > { %5745 = vpow2.f32 %v3964_v26  ;;  %v3955_v29 = vsub.f32 %v5361_v2, %v3943_v7  ;;  %v3950_v30 = vsub.f32 %v3655_v0, %v3928_v28  ;;  %v3388_v2 = vrot.slane %v3374_v57, %v6784_v21 }
 0x987   : > { %v3968_v31 = vmul.f32 1.442695, %v3955_v29  ;;  %v3958_v33 = vmul.f32 1.442695, %v3950_v30 }
 0x988   : > { %v3940_v36 = vpop.xlane.xlu1 %3939  ;;  %v3949_v43 = vpop.xlane.xlu0 %3948 }
 0x989   : > { %5747 = vpow2.f32 %v3968_v31  ;;  %v3954_v40 = vsub.f32 %v3829_v3, %v3940_v36  ;;  %v3957_v48 = vsub.f32 %v5368_v8, %v3949_v43 }
 0x98a   : > { %5749 = vpow2.f32 %v3958_v33 }
 0x98b   : > { %v7205_v42 = vpop.eup %5741  ;;  %v3966_v46 = vmul.f32 1.442695, %v3954_v40  ;;  %v3972_v58 = vmul.f32 1.442695, %v3957_v48 }
 0x98c   : > { %v5744_v47 = vpop.eup %5743  ;;  %v3370_v49 = vpop.permute.xlu1 %3369  ;;  %v3977_v51 = vsel %vm3925_vm5, %v7205_v42, 0.0 }
 0x98d   : > { %v3946_v50 = vpop.xlane.xlu0 %3945  ;;  %5751 = vpow2.f32 %v3966_v46  ;;  %v3449_v10 = vcombine.low %v3358_v16, %v3370_v49  ;;  %5380 = vmatprep.mubr.msk.f32.mxu1 %vm3925_vm5, %v5744_v47  ;;  %3978 = vadd.xlane.f32.xlu1 %v3977_v51  ;;  %v3980_v60 = vsel %vm3925_vm5, %v5744_v47, 0.0 }
 0x98e   : > { %v3956_v52 = vsub.f32 %v3916_v4, %v3946_v50 }
 0x98f   : > { %v7211_v53 = vpop.eup %5745  ;;  %v3456_v55 = vrot.slane %v3449_v10, %v6784_v21 }
 0x990   : > { %v3970_v56 = vmul.f32 1.442695, %v3956_v52  ;;  %v3983_v61 = vsel %vm3925_vm5, %v7211_v53, 0.0 }
 0x991   : > { %v3368_v59 = vpop.permute.xlu0 %3367  ;;  %v3457_v44 = vcombine.low %v3448_v37, %v3456_v55  ;;  %v3458_v62 = vcombine.high %v3448_v37, %v3456_v55  ;;  %3981 = vadd.xlane.f32.xlu1 %v3980_v60  ;;  %3984 = vadd.xlane.f32.xlu0 %v3983_v61 }
 0x992   : > { %5753 = vpow2.f32 %v3970_v56  ;;  %v3389_v34 = vcombine.low %v7201_v14, %v3368_v59  ;;  %v3390_v63 = vcombine.high %v7201_v14, %v3368_v59 }
 0x993   : > { %v7224_v0 = vpop.eup %5747  ;;  %v3465_v32 = vrot.slane %v3457_v44, %v6794_v41  ;;  %v3472_v35 = vrot.slane %v3458_v62, %v6794_v41  ;;  %5755 = vpow2.f32 %v3972_v58 }
 0x994   : > { %v3397_v1 = vrot.slane %v3389_v34, %v6784_v21  ;;  %v5750_v38 = vpop.eup %5749  ;;  %v3404_v8 = vrot.slane %v3390_v63, %v6784_v21  ;;  %v3989_v3 = vsel %vm3925_vm5, %v7224_v0, 0.0 }
 0x995   : > { %v3543_v4 = vcombine.low %v3465_v32, %v3472_v35  ;;  %v5115_v5 = vcombine.high %v3465_v32, %v3472_v35  ;;  %5373 = vmatprep.mubr.msk.f32.mxu0 %vm3925_vm5, %v5750_v38  ;;  %3990 = vadd.xlane.f32.xlu1 %v3989_v3  ;;  %v3974_v14 = vsel %vm3925_vm5, %v5750_v38, 0.0 }
 0x996   : > { %v3405_v6 = vcombine.low %v3381_v9, %v3397_v1  ;;  %v3406_v11 = vcombine.high %v3381_v9, %v3397_v1  ;;  %v3421_v12 = vcombine.low %v3388_v2, %v3404_v8  ;;  %v3422_v13 = vcombine.high %v3388_v2, %v3404_v8  ;;  %3975 = vadd.xlane.f32.xlu0 %v3974_v14 }
 0x997   : > { %v5752_v15 = vpop.eup %5751  ;;  %v3550_v16 = vrot.slane %v3543_v4, %v6784_v21  ;;  %v3558_v17 = vrot.slane %v5115_v5, %v6784_v21 }
 0x998   : > { %v3413_v18 = vrot.slane %v3405_v6, %v6794_v41  ;;  %v3420_v19 = vrot.slane %v3406_v11, %v6794_v41  ;;  %v3429_v20 = vrot.slane %v3421_v12, %v6794_v41  ;;  %v3436_v22 = vrot.slane %v3422_v13, %v6794_v41 }
 0x999   : > { %v3986_v23 = vsel %vm3925_vm5, %v5752_v15, 0.0  ;;  %v3559_v39 = vcombine.low %v3550_v16, %v3558_v17  ;;  %v3560_v43 = vcombine.high %v3550_v16, %v3558_v17 }
 0x99a   : > { %v3475_v24 = vcombine.low %v3413_v18, %v3420_v19  ;;  %v5113_v25 = vcombine.high %v3413_v18, %v3420_v19  ;;  %v3491_v26 = vcombine.low %v3429_v20, %v3436_v22  ;;  %v5114_v7 = vcombine.high %v3429_v20, %v3436_v22  ;;  %3987 = vadd.xlane.f32.xlu0 %v3986_v23 }
 0x99b   : > { %v3567_v45 = vrot.slane %v3559_v39, %v6794_v41  ;;  %v3574_v54 = vrot.slane %v3560_v43, %v6794_v41 }
 0x99c   : > { %v5754_v28 = vpop.eup %5753  ;;  %v3482_v29 = vrot.slane %v3475_v24, %v6784_v21  ;;  %v3490_v30 = vrot.slane %v5113_v25, %v6784_v21  ;;  %v3498_v31 = vrot.slane %v3491_v26, %v6784_v21  ;;  %v3506_v33 = vrot.slane %v5114_v7, %v6784_v21 }
 0x99d   : > { %v3992_v36 = vsel %vm3925_vm5, %v5754_v28, 0.0  ;;  %v5756_v47 = vpop.eup %5755  ;;  %v3575_v55 = vcombine.high %v3567_v45, %v6226_v27  ;;  %v3576_v62 = vcombine.high %v3574_v54, %v6226_v27 }
 0x99e   : > { %v3507_v40 = vcombine.low %v3482_v29, %v3490_v30  ;;  %v3508_v46 = vcombine.high %v3482_v29, %v3490_v30  ;;  %v3523_v48 = vcombine.low %v3498_v31, %v3506_v33  ;;  %v3524_v49 = vcombine.high %v3498_v31, %v3506_v33  ;;  %3993 = vadd.xlane.f32.xlu0 %v3992_v36 }
 0x99f   : > { %v3995_v37 = vsel %vm3925_vm5, %v5756_v47, 0.0 }
 0x9a0   : > { %v3515_v50 = vrot.slane %v3507_v40, %v6794_v41  ;;  %v3522_v51 = vrot.slane %v3508_v46, %v6794_v41  ;;  %v3531_v10 = vrot.slane %v3523_v48, %v6794_v41  ;;  %v3538_v52 = vrot.slane %v3524_v49, %v6794_v41 }
 0x9a2   : > { %v3539_v56 = vcombine.low %v3515_v50, %v3531_v10  ;;  %v3540_v57 = vcombine.high %v3515_v50, %v3531_v10  ;;  %v3541_v58 = vcombine.low %v3522_v51, %v3538_v52  ;;  %v3542_v59 = vcombine.high %v3522_v51, %v3538_v52  ;;  %3996 = vadd.xlane.f32.xlu0 %v3995_v37 }
 0x9a4   : > { %v5496_v61 = vpack.c.bf16 %v3567_v45, %v3539_v56  ;;  %v5502_v44 = vpack.c.bf16 %v3575_v55, %v3540_v57  ;;  %v5508_v34 = vpack.c.bf16 %v3574_v54, %v3541_v58  ;;  %v5514_v63 = vpack.c.bf16 %v3576_v62, %v3542_v59 }
 0x9a6   : > { %5498 = vmatprep.subr.msk.bf16.mxu0 %vm7256_vm8, %v5496_v61  ;;  %5504 = vmatprep.subr.msk.bf16.mxu1 %vm7256_vm8, %v5502_v44 }
 0x9a7   : > { %5501 = vmatpush3.bf16.msk.msra.mxu0 %vm7256_vm8, %v5496_v61  ;;  %5507 = vmatpush3.bf16.msk.msra.mxu1 %vm7256_vm8, %v5502_v44 }
 0x9a8   : > { %5510 = vmatprep.subr.msk.bf16.mxu0 %vm7256_vm8, %v5508_v34  ;;  %5516 = vmatprep.subr.msk.bf16.mxu1 %vm7256_vm8, %v5514_v63 }
 0x9aa   : > { %5374 = vmatmul.mubr.msk.f32.vlgmr.msra.gmra.mrb[12].mxu0 %vm3925_vm5, %v7205_v42  ;;  %5381 = vmatmul.mubr.msk.f32.vlgmr.msra.gmra.mrb[18].mxu1 %vm3925_vm5, %v7211_v53 }
 0x9ab   : > { %5513 = vmatpush3.bf16.msk.msra.mxu0 %vm7256_vm8, %v5508_v34  ;;  %5387 = vmatprep.mubr.msk.f32.mxu0 %vm3925_vm5, %v5752_v15 }
 0x9ac   : > { %5519 = vmatpush3.bf16.msk.msra.mxu1 %vm7256_vm8, %v5514_v63  ;;  %5394 = vmatprep.mubr.msk.f32.mxu1 %vm3925_vm5, %v5754_v28 }
 0x9ae   : > { %5388 = vmatmul.mubr.msk.f32.vlgmr.msra.gmra.mrb[14].mxu0 %vm3925_vm5, %v7224_v0 }
 0x9af   : > { %5395 = vmatmul.mubr.msk.f32.vlgmr.msra.gmra.mrb[20].mxu1 %vm3925_vm5, %v5756_v47 }
 0xa1a   : > { %v3979_v9 = vpop.xlane.xlu1 %3978 }
 0xa1b   : > { %5757 = vrcp.f32 %v3979_v9 }
 0xa1e   : > { %v3985_v27 = vpop.xlane.xlu0 %3984  ;;  %v3982_v53 = vpop.xlane.xlu1 %3981 }
 0xa1f   : > { %5759 = vrcp.f32 %v3982_v53 }
 0xa20   : > { %5761 = vrcp.f32 %v3985_v27 }
 0xa22   : > { %v3991_v1 = vpop.xlane.xlu1 %3990 }
 0xa23   : > { %v3976_v42 = vpop.xlane.xlu0 %3975  ;;  %5763 = vrcp.f32 %v3991_v1 }
 0xa24   : > { %5765 = vrcp.f32 %v3976_v42 }
 0xa25   : > { %v5758_v2 = vpop.eup %5757 }
 0xa27   : > { %v3988_v32 = vpop.xlane.xlu0 %3987 }
 0xa28   : > { %5767 = vrcp.f32 %v3988_v32 }
 0xa29   : > { %v5760_v0 = vpop.eup %5759 }
 0xa2a   : > { %v5762_v4 = vpop.eup %5761 }
 0xa2b   : > { %v3994_v35 = vpop.xlane.xlu0 %3993 }
 0xa2d   : > { %v5764_v11 = vpop.eup %5763 }
 0xa2e   : > { %v5766_v12 = vpop.eup %5765 }
 0xa2f   : > { %v3997_v38 = vpop.xlane.xlu0 %3996 }
 0xa30   : > { %5769 = vrcp.f32 %v3997_v38 }
 0xa31   : > { %5771 = vrcp.f32 %v3994_v35 }
 0xa32   : > { %v5768_v13 = vpop.eup %5767 }
 0xa3a   : > { %v5770_v15 = vpop.eup %5769 }
 0xa3b   : > { %v5772_v20 = vpop.eup %5771 }
 0xa7d   : > { %v5375_v8 = vpop.f32.mrb[12].mxu0  ;;  %v5382_v3 = vpop.f32.mrb[18].mxu1 }
 0xa7e   : > { %v4074_v5 = vpop.f32.mrb[13].mxu0  ;;  %v4158_v6 = vpop.f32.mrb[19].mxu1  ;;  %v4344_v16 = vmul.f32 %v5758_v2, %v5375_v8  ;;  %v4346_v22 = vmul.f32 %v5762_v4, %v5382_v3 }
 0xa7f   : > { %v4343_v23 = vmul.f32 %v5766_v12, %v4074_v5  ;;  %v4345_v26 = vmul.f32 %v5760_v0, %v4158_v6 }
 0xa81   : > { %v5389_v14 = vpop.f32.mrb[14].mxu0 }
 0xa82   : > { %v4348_v17 = vmul.f32 %v5764_v11, %v5389_v14  ;;  %v5396_v18 = vpop.f32.mrb[20].mxu1  ;;  %v4242_v19 = vpop.f32.mrb[15].mxu0 }
 0xa83   : > { %v4350_v24 = vmul.f32 %v5770_v15, %v5396_v18  ;;  %v4347_v25 = vmul.f32 %v5768_v13, %v4242_v19  ;;  %v4326_v39 = vpop.f32.mrb[21].mxu1 }
 0xa84   : > { %v4419_v7 = vcombine.low %v4344_v16, %v4348_v17  ;;  %v4420_v28 = vcombine.high %v4344_v16, %v4348_v17  ;;  %v4349_v29 = vmul.f32 %v5772_v20, %v4326_v39 }
 0xa85   : > { %v4435_v30 = vcombine.low %v4346_v22, %v4350_v24  ;;  %v4436_v31 = vcombine.high %v4346_v22, %v4350_v24  ;;  %v4351_v33 = vcombine.low %v4343_v23, %v4347_v25  ;;  %v4352_v36 = vcombine.high %v4343_v23, %v4347_v25 }
 0xa86   : > { %v4427_v43 = vrot.slane %v4419_v7, %v6784_v21  ;;  %v4434_v40 = vrot.slane %v4420_v28, %v6784_v21  ;;  %v4367_v45 = vcombine.low %v4345_v26, %v4349_v29  ;;  %v4368_v46 = vcombine.high %v4345_v26, %v4349_v29  ;;  %v2752_v29 = vld [vmem:[#allocation16] sm:$0xff] }
 0xa87   : > { %v4443_v47 = vrot.slane %v4435_v30, %v6784_v21  ;;  %v4450_v48 = vrot.slane %v4436_v31, %v6784_v21  ;;  %v4359_v49 = vrot.slane %v4351_v33, %v6784_v21  ;;  %v4366_v50 = vrot.slane %v4352_v36, %v6784_v21  ;;  %v2753_v30 = vld [vmem:[#allocation16 + $0x8] sm:$0xff] }
 0xa88   : > { %v4375_v51 = vrot.slane %v4367_v45, %v6784_v21  ;;  %v4382_v10 = vrot.slane %v4368_v46, %v6784_v21  ;;  %v2755_v45 = vld [vmem:[#allocation16 + $0x18] sm:$0xff] }
 0xa89   : > { %v4451_v52 = vcombine.low %v4427_v43, %v4443_v47  ;;  %v4452_v54 = vcombine.high %v4427_v43, %v4443_v47  ;;  %v4467_v37 = vcombine.low %v4434_v40, %v4450_v48  ;;  %v4468_v55 = vcombine.high %v4434_v40, %v4450_v48  ;;  %v2754_v40 = vld [vmem:[#allocation16 + $0x10] sm:$0xff] }
 0xa8a   : > { %v4383_v56 = vcombine.low %v4359_v49, %v4375_v51  ;;  %v4384_v57 = vcombine.high %v4359_v49, %v4375_v51  ;;  %v4399_v58 = vcombine.low %v4366_v50, %v4382_v10  ;;  %v4400_v59 = vcombine.high %v4366_v50, %v4382_v10 }
 0xa8b   : > { %v4459_v60 = vrot.slane %v4451_v52, %v6794_v41  ;;  %v4466_v61 = vrot.slane %v4452_v54, %v6794_v41  ;;  %v4475_v44 = vrot.slane %v4467_v37, %v6794_v41  ;;  %v4482_v62 = vrot.slane %v4468_v55, %v6794_v41 }
 0xa8c   : > { %v4391_v34 = vrot.slane %v4383_v56, %v6794_v41  ;;  %v4398_v63 = vrot.slane %v4384_v57, %v6794_v41  ;;  %v4407_v27 = vrot.slane %v4399_v58, %v6794_v41  ;;  %v4414_v42 = vrot.slane %v4400_v59, %v6794_v41 }
 0xa8d   : > { %v4555_v9 = vcombine.low %v4459_v60, %v4466_v61  ;;  %v5146_v32 = vcombine.high %v4459_v60, %v4466_v61  ;;  %v4571_v53 = vcombine.low %v4475_v44, %v4482_v62  ;;  %v5147_v35 = vcombine.high %v4475_v44, %v4482_v62 }
 0xa8e   : > { %v4487_v1 = vcombine.low %v4391_v34, %v4398_v63  ;;  %v5144_v38 = vcombine.high %v4391_v34, %v4398_v63  ;;  %v4503_v2 = vcombine.low %v4407_v27, %v4414_v42  ;;  %v5145_v0 = vcombine.high %v4407_v27, %v4414_v42 }
 0xa8f   : > { %v4562_v8 = vrot.slane %v4555_v9, %v6784_v21  ;;  %v4570_v3 = vrot.slane %v5146_v32, %v6784_v21  ;;  %v4578_v4 = vrot.slane %v4571_v53, %v6784_v21  ;;  %v4586_v5 = vrot.slane %v5147_v35, %v6784_v21 }
 0xa90   : > { %v4494_v6 = vrot.slane %v4487_v1, %v6784_v21  ;;  %v4502_v11 = vrot.slane %v5144_v38, %v6784_v21  ;;  %v4510_v12 = vrot.slane %v4503_v2, %v6784_v21  ;;  %v4518_v13 = vrot.slane %v5145_v0, %v6784_v21 }
 0xa91   : > { %v4588_v14 = vcombine.high %v4562_v8, %v4570_v3  ;;  %v4604_v15 = vcombine.high %v4578_v4, %v4586_v5  ;;  %v4587_v16 = vcombine.low %v4562_v8, %v4570_v3  ;;  %v4603_v17 = vcombine.low %v4578_v4, %v4586_v5 }
 0xa92   : > { %v4519_v18 = vcombine.low %v4494_v6, %v4502_v11  ;;  %v4535_v19 = vcombine.low %v4510_v12, %v4518_v13  ;;  %v4520_v20 = vcombine.high %v4494_v6, %v4502_v11  ;;  %v4536_v22 = vcombine.high %v4510_v12, %v4518_v13 }
 0xa93   : > { %v4602_v23 = vrot.slane %v4588_v14, %v6794_v41  ;;  %v4618_v24 = vrot.slane %v4604_v15, %v6794_v41  ;;  %v4595_v25 = vrot.slane %v4587_v16, %v6794_v41  ;;  %v4611_v39 = vrot.slane %v4603_v17, %v6794_v41 }
 0xa94   : > { %v4527_v26 = vrot.slane %v4519_v18, %v6794_v41  ;;  %v4543_v21 = vrot.slane %v4535_v19, %v6794_v41  ;;  %v4534_v7 = vrot.slane %v4520_v20, %v6794_v41  ;;  %v4550_v28 = vrot.slane %v4536_v22, %v6794_v41 }
 0xa95   : > { %v4621_v31 = vcombine.low %v4602_v23, %v4618_v24  ;;  %v4620_v33 = vcombine.high %v4595_v25, %v4611_v39  ;;  %v4622_v36 = vcombine.high %v4602_v23, %v4618_v24  ;;  %v4619_v43 = vcombine.low %v4595_v25, %v4611_v39 }
 0xa96   : > { %v4552_v46 = vcombine.high %v4527_v26, %v4543_v21  ;;  %v4554_v47 = vcombine.high %v4534_v7, %v4550_v28  ;;  %v4553_v48 = vcombine.low %v4534_v7, %v4550_v28  ;;  %v4551_v49 = vcombine.low %v4527_v26, %v4543_v21 }
 0xa97   : > { %4635 = vrot.lane.b32.xlu1 %v4621_v31, %s6223_s16  ;;  %4627 = vrot.lane.b32.xlu0 %v4620_v33, %s6224_s24  ;;  %v5520_v50 = vpack.c.bf16 %v2753_v30, %v2752_v29  ;;  %v5524_v51 = vpack.c.bf16 %v2755_v45, %v2754_v40 }
 0xa99   : > { %5521 = vmatprep.subr.bf16.mxu0 %v5520_v50 }
 0xa9a   : > { %5523 = vmatpush3.bf16.msra.mxu0 %v5520_v50 }
 0xa9b   : > { %4625 = vrot.lane.b32.xlu1 %v4552_v46, %s6224_s24  ;;  %4641 = vrot.lane.b32.xlu0 %v4554_v47, %s6225_s11 }
 0xa9c   : > { %5525 = vmatprep.subr.bf16.mxu0 %v5524_v51 }
 0xa9e   : > { %5527 = vmatpush3.bf16.msra.mxu0 %v5524_v51 }
 0xa9f   : > { %4633 = vrot.lane.b32.xlu1 %v4553_v48, %s6223_s16  ;;  %s6039_s16 = sshll.u32 %s6228_s12, 4  ;;  %s6040_s16 = int_to_ptr.vmem [resolvable:$false] %s6039_s16 }
 0xaa0   : > { %p6042_p9 = scmp.lt.s32.totalorder %s7337_s28, %s6040_s16 }
 0xaa3   : > { %4643 = vrot.lane.b32.xlu1 %v4622_v36, %s6225_s11  ;;  %s6041_s11 = scalar_lea.vmem %s6040_s16, 512 }
 0xaa4   : > { %p6043_p7 = scmp.lt.s32.totalorder %s6041_s11, %s6035_s25 }
 0xaa6   : > { %p6044_p11 = por %p6043_p7, %p6042_p9 }
 0xaa8   : > { %p6045_p10 = pnand %p6044_p11, %p6038_p12 }
 0xb09   : > { %v4636_v41 = vpop.permute.xlu1 %4635  ;;  %v4628_v10 = vpop.permute.xlu0 %4627 }
 0xb0a   : > { %v4648_v55 = vsel %vm1596_vm1, %v4619_v43, %v4628_v10 }
 0xb0b   : > { %v4650_v60 = vsel %vm1945_vm3, %v4648_v55, %v4636_v41 }
 0xb0d   : > { %v4626_v52 = vpop.permute.xlu1 %4625  ;;  %v4642_v56 = vpop.permute.xlu0 %4641 }
 0xb0e   : > { %v4647_v54 = vsel %vm1596_vm1, %v4551_v49, %v4626_v52 }
 0xb11   : > { %v4634_v37 = vpop.permute.xlu1 %4633 }
 0xb12   : > { %v4649_v57 = vsel %vm1945_vm3, %v4647_v54, %v4634_v37 }
 0xb13   : > { %v4651_v58 = vsel %vm2658_vm4, %v4649_v57, %v4642_v56 }
 0xb14   : > { %5405 = vmatprep.mubr.msk.f32.mxu0 %vm638_vm0, %v4651_v58 }
 0xb15   : > { %v4644_v59 = vpop.permute.xlu1 %4643 }
 0xb16   : > { %v4652_v61 = vsel %vm2658_vm4, %v4650_v60, %v4644_v59 }
 0xb17   : > { %5406 = vmatmul.mubr.msk.f32.vlgmr.msra.gmra.mrb[16].mxu0 %vm638_vm0, %v4652_v61 }
 0xb18   : > { %6048 = shalt.err (!%p6045_p10)
}
 0xb19   : > { %s6049_s6 = scalar_lea.hbm %s7345_s1, 256  ;;  %s6053_s5 = scalar_lea.hbm %s7585_s26, 1024 }
 0xb1a   : > { %p6050_p8 = scmp.ne.s32.totalorder %s7345_s1, %s6049_s6  ;;  %p6054_p3 = scmp.lt.u32.totalorder %s7345_s1, %s7585_s26 }
 0xb1b   : > { %p6055_p4 = scmp.lt.u32.totalorder %s6053_s5, %s6049_s6  ;;  %p6057_p1 = scmp.lt.u32.totalorder %s6049_s6, %s7345_s1 }
 0xb1c   : > { %p6051_p6 = pnand %p6050_p8, %p7586_p5 }
 0xb1d   : > { %p6056_p13 = por %p6055_p4, %p6054_p3 }
 0xb1e   : > { %p6052_p2 = pneg %p6051_p6 }
 0xb1f   : > { %p6058_p0 = por %p6057_p1, %p6056_p13 }
 0xb21   : > { %p6059_p12 = pnand %p6058_p0, %p6052_p2 }
 0xb23   : > { %6062 = shalt.err (!%p6059_p12)
}
 0xb24   : > { %s6229_s19 = smov 128   ;;  %s620_s25 = scalar_lea.vmem [#allocation18], %s6740_s7 }
 0xb25   : > { %5554 = dma.vmem_to_hbm [thread:$0]  (%p7586_p5), %s7337_s28, 256, %s7345_s1, %s4737_s10, %s6229_s19, %s6229_s19, %s6224_s24  }
 0xb26   : > { %s4775_s12 = sshll.u32 %s620_s25, 4  ;;  %s7587_s6 = sld [smem:[#allocation52_spill]]  ;;  %s7375_s12 = int_to_ptr.vmem [resolvable:$true] %s4775_s12 }
 0xb27   : > { %s4742_s28 = scalar_lea.sflag [#allocation19], %s6737_s14  ;;  %s6063_s7 = scalar_lea.vmem %s7375_s12, 256 }
 0xb28   : > { %p6064_p9 = scmp.ne.s32.totalorder %s7375_s12, %s6063_s7  ;;  %s6230_s1 = smov [#allocation18]  }
 0xb29   : > { %s6067_s10 = sshll.u32 %s6230_s1, 4  ;;  %s6068_s10 = int_to_ptr.vmem [resolvable:$false] %s6067_s10 }
 0xb2a   : > { %p6065_p7 = pnand %p6064_p9, %p7586_p5  ;;  %s6069_s2 = scalar_lea.vmem %s6068_s10, 512 }
 0xb2b   : > { %p6070_p10 = scmp.lt.s32.totalorder %s7375_s12, %s6068_s10  ;;  %p6071_p8 = scmp.lt.s32.totalorder %s6069_s2, %s6063_s7 }
 0xb2c   : > { %s7382_s0 = scalar_lea.hbm %s7587_s6, %s5154_s13  ;;  %p6066_p11 = pneg %p6065_p7 }
 0xb2d   : > { %p6072_p6 = por %p6071_p8, %p6070_p10 }
 0xb2f   : > { %p6073_p2 = pnand %p6072_p6, %p6066_p11 }
 0xbea   : > { %v5407_v44 = vpop.f32.mrb[16].mxu0 }
 0xbeb   : > { %4735 = vst.msk [vmem:[%s620_s25 + $0x8] sm:$0xff] %vm638_vm0, %v5407_v44  ;;  %v4725_v62 = vpop.f32.mrb[17].mxu0 }
 0xbec   : > { %4734 = vst.msk [vmem:[%s620_s25] sm:$0xff] %vm638_vm0, %v4725_v62 }
 0xbed   : > { %6076 = shalt.err (!%p6073_p2)
}
 0xbee   : > { %s6077_s13 = scalar_lea.hbm %s7382_s0, 256  ;;  %s6081_s8 = scalar_lea.hbm %s7587_s6, 1024 }
 0xbef   : > { %p6078_p3 = scmp.ne.s32.totalorder %s7382_s0, %s6077_s13  ;;  %p6082_p1 = scmp.lt.u32.totalorder %s7382_s0, %s7587_s6 }
 0xbf0   : > { %p6083_p0 = scmp.lt.u32.totalorder %s6081_s8, %s6077_s13  ;;  %p6085_p9 = scmp.lt.u32.totalorder %s6077_s13, %s7382_s0 }
 0xbf1   : > { %p6079_p4 = pnand %p6078_p3, %p7586_p5 }
 0xbf2   : > { %p6084_p12 = por %p6083_p0, %p6082_p1 }
 0xbf3   : > { %p6080_p13 = pneg %p6079_p4 }
 0xbf4   : > { %p6086_p7 = por %p6085_p9, %p6084_p12 }
 0xbf6   : > { %p6087_p11 = pnand %p6086_p7, %p6080_p13 }
 0xbf8   : > { %6090 = shalt.err (!%p6087_p11)
}
 0xbf9   : > { %5555 = dma.vmem_to_hbm [thread:$0]  (%p7586_p5), %s7375_s12, 256, %s7382_s0, %s4742_s28, %s6229_s19, %s6229_s19, %s6224_s24  }
 0xbfa PF: > { %s7588_s16 = sld [smem:[#allocation28_spill]]  ;;  %s7589_s11 = sld [smem:[#allocation41_spill]] }
 0xbfb   : > { %p5603_p10 = scmp.ge.s32.totalorder %s6205_s23, 2 }
 0xc00   : > { %s4790_s7 = sand.u32 1, %s7588_s16   ;;  %p7590_p8 = scmp.ne.s32.totalorder %s7589_s11, 0 }
 0xc01   : > { %s4791_s1 = scalar_lea.sflag [#allocation4], %s4790_s7 }
 0xc02   : > { %p5588_p6 = pnand %p5603_p10, %p7590_p8 }
 0xc04   : > { %6156 = dma.done.wait (!%p5588_p6), %s4791_s1, 256  }
 0xc05   : > { %6158 = vsyncadd (!%p5588_p6), %s4791_s1, 4294967040  ;;  %s4800_s30 = scalar_lea.sflag [#allocation19], %s4790_s7 }
 0xc06   : > { %6160 = dma.done.wait (!%p5588_p6), %s4800_s30, 256  }
 0xc07   : > { %6162 = vsyncadd (!%p5588_p6), %s4800_s30, 4294967040  ;;  %s38_s23 = sadd.s32 1, %s6205_s23   ;;  %s7591_s13 = sld [smem:[#allocation27_spill]] }
 0xc08   : > { %p35_p2 = scmp.ge.s32.totalorder %s38_s23, 6   ;;  %s7592_s16 = sld [smem:[#allocation29_spill]] }
 0xc09   : > { %s7593_s24 = sld [smem:[#allocation37_spill]]  ;;  %s7594_s12 = sld [smem:[#allocation39_spill]] }
 0xc0a   : > { %s7595_s14 = smov %s6173_s15  ;;  %s7596_s15 = smov %s6610_s29 }
 0xc0b   : > { %s7597_s17 = smov %s6185_s18  ;;  %s7598_s18 = smov %s6613_s3 }
 0xc0c   : > { %s7599_s19 = smov %s6197_s21  ;;  %s7600_s20 = smov %s6201_s22 }
 0xc0d   :  { %37 = sbr.rel (!%p35_p2) target bundleno = 29 (0x1d), region = 182 }
 0xc0f   : > { %s7601_s21 = smov %s7593_s24  ;;  %s7602_s22 = smov %s7594_s12 }
 0xc14   :  { %4805 = vsyncpa [#allocation3], 1 }
 0xc15   :  { %4807 = vsyncpa [#allocation3 + $0x1], 1 }
 0xc16   :  { %4808 = vsyncpa [#allocation6], 1 }
 0xc17   :  { %4810 = vsyncpa [#allocation6 + $0x1], 1 }
 0xc18   :  { %4811 = vsyncpa [#allocation9], 1 }
 0xc19   :  { %4813 = vsyncpa [#allocation9 + $0x1], 1 }
 0xc1a   :  { %4814 = vsyncpa [#allocation12], 1 }
 0xc1b   :  { %4815 = vsyncpa [#allocation15], 1 }
 0xc1c   :  { %4816 = vsyncpa [#allocation4], 1 }
 0xc1d   :  { %4818 = vsyncpa [#allocation4 + $0x1], 1 }
 0xc1e   :  { %4819 = vsyncpa [#allocation19], 1 }
 0xc1f   :  { %4821 = vsyncpa [#allocation19 + $0x1], 1 }

</bundles_post_ra>
